<compile_context>
chip_gen: v5e
topology: v5e:2x2
jax: 0.10.0
libtpu: 0.0.40
codegen_flags: <defaults>
</compile_context>

<pallas_src>
import functools
import math

import numpy as np
import jax
import jax.numpy as jnp
from jax.experimental import pallas as pl
from jax.experimental.pallas import tpu as pltpu


# ----------------------------------------------------------------------------
# Host-side helpers mirroring getZIdx_3d / ZIdx2Int (pure index bookkeeping).
# ----------------------------------------------------------------------------
def get_zidx_3d(C, K1, K2):
    m1 = np.arange(C, dtype=np.float64) + np.arange(C, dtype=np.float64) / (C + 1.0)
    m2 = np.arange(K1, dtype=np.float64) + np.arange(K1, dtype=np.float64) / ((C + 1.0) * (K1 + 1.0))
    m3 = np.arange(K2, dtype=np.float64) + np.arange(K2, dtype=np.float64) / ((C + 1.0) * (K1 + 1.0) * (K2 + 1.0))
    return m1[:, None, None] + m2[None, :, None] + m3[None, None, :]


def zidx2int(mat):
    flat = mat.reshape(-1)
    rank = np.argsort(np.argsort(flat, kind="stable"), kind="stable")
    return rank.reshape(mat.shape)


def idct_matrix(N, norm="ortho"):
    # B such that idct(v) = B @ v along one axis (inverse of DCT-II).
    # TODO(synk): idct_3d's source was not provided; assuming torch_dct-style
    #             separable IDCT with norm='ortho' (the common freq-reg choice).
    n = np.arange(N, dtype=np.float64)[:, None]
    k = np.arange(N, dtype=np.float64)[None, :]
    B = np.cos(np.pi * (n + 0.5) * k / N)
    if norm == "ortho":
        w = np.full((N,), math.sqrt(2.0 / N))
        w[0] = math.sqrt(1.0 / N)
    else:
        w = np.full((N,), 1.0 / N)
        w[0] = 1.0 / (2.0 * N)
    return (B * w[None, :]).astype(np.float32)


def _round_up(x, m):
    return (x + m - 1) // m * m


def _tile_bytes(shape, itemsize):
    """Rough VMEM footprint of one buffer, with (8,128) tile padding."""
    if len(shape) == 1:
        lead, s, l = 1, 1, shape[0]
    else:
        *lead_dims, s, l = shape
        lead = int(np.prod(lead_dims)) if lead_dims else 1
    return lead * _round_up(s, 8) * _round_up(l, 128) * itemsize


# ----------------------------------------------------------------------------
# In-kernel helpers.
# ----------------------------------------------------------------------------
def _tap_lhs(x_ref, base, shift, TR, stride):
    """Bounded per-tap read straight from the VMEM ref (no full-slab value)."""
    if stride == 1:
        return x_ref[pl.ds(base + shift, TR), :]
    span = (TR - 1) * stride + 1
    # Contiguous ref read of the bounded span + static-stride value slice.
    # TODO(synk): switch to x_ref[pl.ds(start, TR, stride=stride), :] once the
    #             strided *dynamic* ref load is confirmed on all target chips.
    return x_ref[pl.ds(base + shift, span), :][::stride]


def _row_base(TR, stride):
    base = pl.program_id(1) * (TR * stride)
    if (TR * stride) % 8 == 0:
        base = pl.multiple_of(base, 8)   # sublane-aligned tile base
    return base


# ----------------------------------------------------------------------------
# Pallas kernels.
#   x_ref : (rows, Cin)      flattened padded NHWC slab (row pitch = Wp),
#                            resident in VMEM across the inner grid axes.
#   o_ref : (TR, TCO)        one flat output-row tile (cols ow>=OW and rows>=R
#                            are garbage and cropped by the host wrapper).
# ----------------------------------------------------------------------------
def _conv2d_im2col_kernel(x_ref, w_ref, b_ref, o_ref, lhs_ref, *,
                          KH, KW, Cin, Wp, stride, TR, use_bias):
    # Small-Cin path: fold all KH*KW taps into the matmul contraction.
    #   w_ref  : (KH*KW*Cin, TCO)
    #   lhs_ref: (TR, KH*KW*Cin) VMEM scratch (im2col tile)
    base = _row_base(TR, stride)
    for kh in range(KH):
        for kw in range(KW):
            t = kh * KW + kw
            lhs_ref[:, t * Cin:(t + 1) * Cin] = _tap_lhs(
                x_ref, base, kh * Wp + kw, TR, stride)
    acc = jax.lax.dot_general(
        lhs_ref[...], w_ref[...],
        dimension_numbers=(((1,), (0,)), ((), ())),
        preferred_element_type=jnp.float32)
    if use_bias:
        acc = acc + b_ref[...]                       # fused into the epilogue
    o_ref[...] = acc.astype(o_ref.dtype)


def _conv2d_taps_kernel(x_ref, w_ref, b_ref, o_ref, acc_ref, *,
                        KH, KW, Wp, stride, TR, use_bias):
    # Large-Cin path: one MXU matmul per tap, accumulated in a bounded
    # (TR, TCO) f32 VMEM scratch.
    #   w_ref : (KH*KW, Cin, TCO)
    base = _row_base(TR, stride)
    acc_ref[...] = jnp.zeros_like(acc_ref)
    for kh in range(KH):
        for kw in range(KW):
            lhs = _tap_lhs(x_ref, base, kh * Wp + kw, TR, stride)
            acc_ref[...] += jax.lax.dot_general(
                lhs, w_ref[kh * KW + kw],
                dimension_numbers=(((1,), (0,)), ((), ())),
                preferred_element_type=jnp.float32)
    acc = acc_ref[...]
    if use_bias:
        acc = acc + b_ref[...]
    o_ref[...] = acc.astype(o_ref.dtype)


# ----------------------------------------------------------------------------
# Jitted forward: weight mask + separable 3-D IDCT (tiny, plain XLA) feeding
# the Pallas conv kernel.
# ----------------------------------------------------------------------------
@functools.partial(jax.jit,
                   static_argnames=("stride", "padding", "ifbias",
                                    "compute_dtype", "out_dtype", "vmem_cap"))
def _conv2d_fr3d_forward(x_nchw, weight, bias, idrop, b_c, b_kh, b_kw, *,
                         stride, padding, ifbias, compute_dtype, out_dtype,
                         vmem_cap):
    O, C, KH, KW = weight.shape
    N = x_nchw.shape[0]

    # ---- weight path: mask + separable 3-D inverse DCT -> (KH, KW, Cin, O).
    w = weight * idrop[None]
    w = jnp.einsum("oabc,da->odbc", w, b_c)     # IDCT along Cin
    w = jnp.einsum("odbc,eb->odec", w, b_kh)    # IDCT along KH
    w = jnp.einsum("odec,fc->efdo", w, b_kw)    # IDCT along KW -> (KH,KW,C,O)

    cout_p = _round_up(O, 128)                  # lane-dense output / matmul RHS
    w = jnp.pad(w, ((0, 0), (0, 0), (0, 0), (0, cout_p - O)))
    bvec = jnp.pad(bias, (0, cout_p - O)).reshape(1, cout_p).astype(jnp.float32)

    KC = KH * KW * C
    use_im2col = KC <= 256                      # small-Cin: fold taps into K
    if use_im2col:
        w = w.reshape(KC, cout_p)               # column order == im2col order
    else:
        w = w.reshape(KH * KW, C, cout_p)
    w = w.astype(compute_dtype)                 # bf16 cast done HOST-side

    # ---- activations: NCHW -> NHWC, spatial pad, flatten spatial.
    p = padding
    x = jnp.transpose(x_nchw, (0, 2, 3, 1))
    x = jnp.pad(x, ((0, 0), (p, p), (p, p), (0, 0)))
    Hp, Wp = x.shape[1], x.shape[2]
    OH = (Hp - KH) // stride + 1
    OW = (Wp - KW) // stride + 1
    R = OH * Wp                                 # flat output rows (pitch Wp)

    # ---- output-row tiling (bounds accumulator/output, feeds v7x's 2 TCs).
    n_tiles = max(1, -(-R // 256))              # target ~256 rows per tile
    if n_tiles == 1 and R >= 64:
        n_tiles = 2                             # give the 2nd TensorCore a grain
    TR = _round_up(-(-R // n_tiles), 8)
    R_pad = _round_up(R, TR)
    nrb = R_pad // TR

    # Tail-row pad so every tap slice of every (incl. garbage) row tile is
    # in-bounds: max flat input row read = stride*(R_pad-1)+(KH-1)*Wp+(KW-1).
    needed = stride * (R_pad - 1) + (KH - 1) * Wp + (KW - 1) + 1
    extra = max(0, needed - Hp * Wp)
    xf = x.reshape(N, Hp * Wp, C)
    if extra > 0:
        xf = jnp.pad(xf, ((0, 0), (0, extra), (0, 0)))
    rows = Hp * Wp + extra
    xf = xf.astype(compute_dtype)               # bf16 cast done HOST-side

    # ---- Cout blocking (tco=128 already full MXU width on v5e; 256 is fine
    #      on v6e/v7x when Cout allows).
    tco = 256 if cout_p % 256 == 0 else 128
    ncb = cout_p // tco

    # ---- generation-aware VMEM budget.
    c_item = jnp.dtype(compute_dtype).itemsize
    o_item = jnp.dtype(out_dtype).itemsize
    x_slab_bytes = _tile_bytes((rows, C), c_item)
    single_buffer_x = x_slab_bytes > (8 << 20)  # big slabs: no 2nd pipeline buf
    w_blk = (KC, tco) if use_im2col else (KH * KW, C, tco)
    scratch_bytes = (_tile_bytes((TR, KC), c_item) if use_im2col
                     else _tile_bytes((TR, tco), 4))
    est = (x_slab_bytes * (1 if single_buffer_x else 2)
           + 2 * _tile_bytes(w_blk, c_item)
           + 2 * _tile_bytes((1, tco), 4)
           + 2 * _tile_bytes((TR, tco), o_item)
           + scratch_bytes)
    cap = int(vmem_cap * 0.85)                  # ~54 MiB v7x, ~108 MiB v5e/v6e
    vmem_limit = max(32 << 20, min(cap, int(est * 1.5) + (4 << 20)))
    # TODO(synk): if est approaches cap (huge feature maps), shrink TR / switch
    #             to halo'd x row windows instead of a resident slab.

    x_spec_kw = {}
    if single_buffer_x:
        # x's block index only changes with n (outermost axis): a second
        # pipeline buffer is pure VMEM waste (matters on v7x's 64 MiB/TC).
        x_spec_kw = dict(pipeline_mode=pl.Buffered(1))
    in_specs = [
        pl.BlockSpec((None, rows, C), lambda n, r, j: (n, 0, 0), **x_spec_kw),
        (pl.BlockSpec((KC, tco), lambda n, r, j: (0, j)) if use_im2col
         else pl.BlockSpec((KH * KW, C, tco), lambda n, r, j: (0, 0, j))),
        pl.BlockSpec((1, tco), lambda n, r, j: (0, j)),
    ]
    out_spec = pl.BlockSpec((None, TR, tco), lambda n, r, j: (n, r, j))

    if use_im2col:
        kern = functools.partial(_conv2d_im2col_kernel, KH=KH, KW=KW, Cin=C,
                                 Wp=Wp, stride=stride, TR=TR, use_bias=ifbias)
        scratch = [pltpu.VMEM((TR, KC), compute_dtype)]
    else:
        kern = functools.partial(_conv2d_taps_kernel, KH=KH, KW=KW, Wp=Wp,
                                 stride=stride, TR=TR, use_bias=ifbias)
        scratch = [pltpu.VMEM((TR, tco), jnp.float32)]

    flops = 2 * N * R_pad * KC * cout_p
    bytes_accessed = (c_item * (N * rows * C + KC * cout_p)
                      + o_item * N * R_pad * cout_p)

    out = pl.pallas_call(
        kern,
        out_shape=jax.ShapeDtypeStruct((N, R_pad, cout_p), out_dtype),
        grid=(N, nrb, ncb),
        in_specs=in_specs,
        out_specs=out_spec,
        scratch_shapes=scratch,
        compiler_params=pltpu.CompilerParams(
            dimension_semantics=("parallel", "parallel", "parallel"),
            vmem_limit_bytes=vmem_limit,
        ),
        cost_estimate=pl.CostEstimate(flops=int(flops), transcendentals=0,
                                      bytes_accessed=int(bytes_accessed)),
    )(xf, w, bvec)

    # (N, R_pad, Cout_p) -> drop garbage rows/cols & channel padding -> NCHW.
    y = out[:, :R].reshape(N, OH, Wp, cout_p)[:, :, :OW, :O]
    return jnp.transpose(y, (0, 3, 1, 2))


# ----------------------------------------------------------------------------
# Module wrapper (parameters + buffers + stateful drop bookkeeping in Python).
# ----------------------------------------------------------------------------
class Conv2dFR3d:
    def __init__(self, in_channels, out_channels, kernel_size, stride=1,
                 padding=0, bias=True, minrate=0.1, droprate=0.001,
                 dropspeed=-1, dynamicdrop=False, key=None,
                 compute_dtype=jnp.float32, out_dtype=jnp.float32):
        key = jax.random.PRNGKey(0) if key is None else key
        kw_, kb_ = jax.random.split(key)
        self.weight = 0.1 * jax.random.normal(
            kw_, (out_channels, in_channels, kernel_size, kernel_size), jnp.float32)
        self.bias = 0.1 * jax.random.normal(kb_, (out_channels,), jnp.float32)
        self.stride = stride
        self.padding = padding
        self.ifbias = bias
        # compute_dtype=jnp.bfloat16 -> fast MXU + halved DMA (f32 accumulation);
        # out_dtype=jnp.bfloat16 halves output writeback for mem-bound layers.
        self.compute_dtype = compute_dtype
        self.out_dtype = out_dtype
        self.ZMAT = zidx2int(get_zidx_3d(in_channels, kernel_size, kernel_size))
        self.IMAT = np.ones((in_channels, kernel_size, kernel_size), np.float32)
        self.IDROP = np.ones((in_channels, kernel_size, kernel_size), np.float32)
        self.BMAT = np.ones((out_channels,), np.float32)
        self.minrate = minrate
        self.minnum = max(round(in_channels * kernel_size * kernel_size * minrate), 8)
        self.dynamicdrop = dynamicdrop
        self.dropcnt = self.ZMAT.size
        self.dropspeed = dropspeed if dropspeed > 0 else droprate * self.ZMAT.size
        self.weightrate = 0.0
        self.weightnum = -1.0
        self.biasrate = 0.0
        self.biasnum = -1.0
        # Separable 1-D IDCT operators (no (C*K*K)^2 kron blow-up).
        self.B_C = idct_matrix(in_channels)
        self.B_KH = idct_matrix(kernel_size)
        self.B_KW = idct_matrix(kernel_size)
        # Physical VMEM (64 MiB/TC on v7x, 128 MiB on v5e/v6e) for the budget.
        try:
            self.vmem_cap = int(getattr(pltpu.get_tpu_info(),
                                        "vmem_capacity_bytes", 64 << 20))
        except Exception:
            self.vmem_cap = 64 << 20

    def _update_drop_state(self):
        # Host-side buffer mutation — mirrors the stateful part of torch forward.
        if self.dropcnt <= self.minnum:
            self.dropcnt = self.IDROP.size
            if self.dynamicdrop:
                self.IDROP = self.IMAT.copy()
        else:
            keep = self.ZMAT < self.dropcnt
            self.IDROP = np.where(keep, self.IDROP, 0.0).astype(np.float32)
            self.weightnum = float(self.IDROP.sum())
            self.weightrate = float(self.IDROP.sum() / self.IDROP.size)
            self.dropcnt = self.dropcnt - self.dropspeed

    def __call__(self, x_nchw):
        self._update_drop_state()
        return _conv2d_fr3d_forward(
            x_nchw, self.weight, self.bias, jnp.asarray(self.IDROP),
            jnp.asarray(self.B_C), jnp.asarray(self.B_KH), jnp.asarray(self.B_KW),
            stride=self.stride, padding=self.padding, ifbias=self.ifbias,
            compute_dtype=self.compute_dtype, out_dtype=self.out_dtype,
            vmem_cap=self.vmem_cap)


# ----------------------------------------------------------------------------
# Independent reference: kron-based 3-D IDCT + lax.conv.
# ----------------------------------------------------------------------------
def _conv_ref(x, mod):
    Cw = mod.weight.shape[1]
    Kh, Kw = mod.weight.shape[2], mod.weight.shape[3]
    T = np.kron(idct_matrix(Cw), np.kron(idct_matrix(Kh), idct_matrix(Kw))).astype(np.float32)
    O = mod.weight.shape[0]
    wm = mod.weight * jnp.asarray(mod.IDROP)[None]
    w_ref = (wm.reshape(O, -1) @ jnp.asarray(T).T).reshape(mod.weight.shape)
    out = jax.lax.conv_general_dilated(
        x, w_ref, window_strides=(mod.stride, mod.stride),
        padding=[(mod.padding, mod.padding)] * 2,
        dimension_numbers=("NCHW", "OIHW", "NCHW"))
    if mod.ifbias:
        out = out + mod.bias.reshape(1, O, 1, 1)
    return out


if __name__ == "__main__":
    key = jax.random.PRNGKey(0)
    k_x, k_p1, k_p2, k_x2 = jax.random.split(key, 4)

    # --- test 1: stride=1, padding=1, f32 -------------------------------
    N, C, H, W = 2, 4, 16, 16
    Cout, K = 8, 3
    x = jax.random.normal(k_x, (N, C, H, W), jnp.float32)
    mod = Conv2dFR3d(C, Cout, K, stride=1, padding=1, bias=True, key=k_p1)
    y = jax.block_until_ready(mod(x))
    assert y.shape == (N, Cout, H, W), y.shape
    np.testing.assert_allclose(np.asarray(y), np.asarray(_conv_ref(x, mod)),
                               rtol=5e-2, atol=5e-2)

    # --- test 2: stride=2, padding=1, odd spatial dims (exercises the
    #     stride>1 tap slicing and the tail-row padding formula) ----------
    N2, H2, W2 = 2, 15, 15
    x2 = jax.random.normal(k_x2, (N2, C, H2, W2), jnp.float32)
    mod2 = Conv2dFR3d(C, Cout, K, stride=2, padding=1, bias=True, key=k_p2)
    y2 = jax.block_until_ready(mod2(x2))
    assert y2.shape == (N2, Cout, 8, 8), y2.shape
    np.testing.assert_allclose(np.asarray(y2), np.asarray(_conv_ref(x2, mod2)),
                               rtol=5e-2, atol=5e-2)

    # --- test 3: bf16 MXU path (host-side casts, f32 accumulation) -------
    mod3 = Conv2dFR3d(C, Cout, K, stride=1, padding=1, bias=True, key=k_p1,
                      compute_dtype=jnp.bfloat16, out_dtype=jnp.bfloat16)
    y3 = jax.block_until_ready(mod3(x))
    np.testing.assert_allclose(np.asarray(y3.astype(jnp.float32)),
                               np.asarray(_conv_ref(x, mod3)),
                               rtol=1e-1, atol=5e-2)

    print("KERNEL_OK")
</pallas_src>

<mosaic_0001>
module attributes {stable_mosaic.version = 11 : i64} {
  func.func @_conv2d_im2col_kernel(%arg0: i32, %arg1: i32, %arg2: i32, %arg3: memref<1x326x4xf32, #tpu.memory_space<vmem>>, %arg4: memref<36x128xf32, #tpu.memory_space<vmem>>, %arg5: memref<1x128xf32, #tpu.memory_space<vmem>>, %arg6: memref<1x144x128xf32, #tpu.memory_space<vmem>>, %arg7: memref<144x36xf32, #tpu.memory_space<vmem>>) attributes {dimension_semantics = [#tpu.dimension_semantics<parallel>, #tpu.dimension_semantics<parallel>, #tpu.dimension_semantics<parallel>], iteration_bounds = array<i64: 2, 2, 1>, scalar_prefetch = 0 : i64, scratch_operands = 1 : i64, tpu.core_type = #tpu.core_type<tc>, window_params = [{transform_indices = @transform_0, window_bounds = array<i64: 1, 326, 4>}, {transform_indices = @transform_1, window_bounds = array<i64: 36, 128>}, {transform_indices = @transform_2, window_bounds = array<i64: 1, 128>}, {transform_indices = @transform_3, window_bounds = array<i64: 1, 144, 128>}]} {
    %c144_i32 = arith.constant 144 : i32
    %0 = arith.muli %arg1, %c144_i32 : i32
    %1 = tpu.assume_multiple %0, 8 : i32
    %c0_i32 = arith.constant 0 : i32
    %2 = arith.addi %1, %c0_i32 : i32
    %c0 = arith.constant 0 : index
    %3 = arith.index_cast %2 : i32 to index
    %c0_0 = arith.constant 0 : index
    %4 = vector.load %arg3[%c0, %3, %c0_0] : memref<1x326x4xf32, #tpu.memory_space<vmem>>, vector<1x144x4xf32>
    %5 = vector.shape_cast %4 : vector<1x144x4xf32> to vector<144x4xf32>
    %c0_1 = arith.constant 0 : index
    %c0_2 = arith.constant 0 : index
    %6 = vector.load %arg7[%c0_1, %c0_2] : memref<144x36xf32, #tpu.memory_space<vmem>>, vector<144x4xf32>
    tpu.vector_store %arg7[%c0_1, %c0_2], %5 {strides = array<i32>} : memref<144x36xf32, #tpu.memory_space<vmem>>, vector<144x4xf32>,
    %c1_i32 = arith.constant 1 : i32
    %7 = arith.addi %1, %c1_i32 : i32
    %c0_3 = arith.constant 0 : index
    %8 = arith.index_cast %7 : i32 to index
    %c0_4 = arith.constant 0 : index
    %9 = vector.load %arg3[%c0_3, %8, %c0_4] : memref<1x326x4xf32, #tpu.memory_space<vmem>>, vector<1x144x4xf32>
    %10 = vector.shape_cast %9 : vector<1x144x4xf32> to vector<144x4xf32>
    %c0_5 = arith.constant 0 : index
    %c4 = arith.constant 4 : index
    %11 = vector.load %arg7[%c0_5, %c4] : memref<144x36xf32, #tpu.memory_space<vmem>>, vector<144x4xf32>
    tpu.vector_store %arg7[%c0_5, %c4], %10 {strides = array<i32>} : memref<144x36xf32, #tpu.memory_space<vmem>>, vector<144x4xf32>,
    %c2_i32 = arith.constant 2 : i32
    %12 = arith.addi %1, %c2_i32 : i32
    %c0_6 = arith.constant 0 : index
    %13 = arith.index_cast %12 : i32 to index
    %c0_7 = arith.constant 0 : index
    %14 = vector.load %arg3[%c0_6, %13, %c0_7] : memref<1x326x4xf32, #tpu.memory_space<vmem>>, vector<1x144x4xf32>
    %15 = vector.shape_cast %14 : vector<1x144x4xf32> to vector<144x4xf32>
    %c0_8 = arith.constant 0 : index
    %c8 = arith.constant 8 : index
    %16 = vector.load %arg7[%c0_8, %c8] : memref<144x36xf32, #tpu.memory_space<vmem>>, vector<144x4xf32>
    tpu.vector_store %arg7[%c0_8, %c8], %15 {strides = array<i32>} : memref<144x36xf32, #tpu.memory_space<vmem>>, vector<144x4xf32>,
    %c18_i32 = arith.constant 18 : i32
    %17 = arith.addi %1, %c18_i32 : i32
    %c0_9 = arith.constant 0 : index
    %18 = arith.index_cast %17 : i32 to index
    %c0_10 = arith.constant 0 : index
    %19 = vector.load %arg3[%c0_9, %18, %c0_10] : memref<1x326x4xf32, #tpu.memory_space<vmem>>, vector<1x144x4xf32>
    %20 = vector.shape_cast %19 : vector<1x144x4xf32> to vector<144x4xf32>
    %c0_11 = arith.constant 0 : index
    %c12 = arith.constant 12 : index
    %21 = vector.load %arg7[%c0_11, %c12] : memref<144x36xf32, #tpu.memory_space<vmem>>, vector<144x4xf32>
    tpu.vector_store %arg7[%c0_11, %c12], %20 {strides = array<i32>} : memref<144x36xf32, #tpu.memory_space<vmem>>, vector<144x4xf32>,
    %c19_i32 = arith.constant 19 : i32
    %22 = arith.addi %1, %c19_i32 : i32
    %c0_12 = arith.constant 0 : index
    %23 = arith.index_cast %22 : i32 to index
    %c0_13 = arith.constant 0 : index
    %24 = vector.load %arg3[%c0_12, %23, %c0_13] : memref<1x326x4xf32, #tpu.memory_space<vmem>>, vector<1x144x4xf32>
    %25 = vector.shape_cast %24 : vector<1x144x4xf32> to vector<144x4xf32>
    %c0_14 = arith.constant 0 : index
    %c16 = arith.constant 16 : index
    %26 = vector.load %arg7[%c0_14, %c16] : memref<144x36xf32, #tpu.memory_space<vmem>>, vector<144x4xf32>
    tpu.vector_store %arg7[%c0_14, %c16], %25 {strides = array<i32>} : memref<144x36xf32, #tpu.memory_space<vmem>>, vector<144x4xf32>,
    %c20_i32 = arith.constant 20 : i32
    %27 = arith.addi %1, %c20_i32 : i32
    %c0_15 = arith.constant 0 : index
    %28 = arith.index_cast %27 : i32 to index
    %c0_16 = arith.constant 0 : index
    %29 = vector.load %arg3[%c0_15, %28, %c0_16] : memref<1x326x4xf32, #tpu.memory_space<vmem>>, vector<1x144x4xf32>
    %30 = vector.shape_cast %29 : vector<1x144x4xf32> to vector<144x4xf32>
    %c0_17 = arith.constant 0 : index
    %c20 = arith.constant 20 : index
    %31 = vector.load %arg7[%c0_17, %c20] : memref<144x36xf32, #tpu.memory_space<vmem>>, vector<144x4xf32>
    tpu.vector_store %arg7[%c0_17, %c20], %30 {strides = array<i32>} : memref<144x36xf32, #tpu.memory_space<vmem>>, vector<144x4xf32>,
    %c36_i32 = arith.constant 36 : i32
    %32 = arith.addi %1, %c36_i32 : i32
    %c0_18 = arith.constant 0 : index
    %33 = arith.index_cast %32 : i32 to index
    %c0_19 = arith.constant 0 : index
    %34 = vector.load %arg3[%c0_18, %33, %c0_19] : memref<1x326x4xf32, #tpu.memory_space<vmem>>, vector<1x144x4xf32>
    %35 = vector.shape_cast %34 : vector<1x144x4xf32> to vector<144x4xf32>
    %c0_20 = arith.constant 0 : index
    %c24 = arith.constant 24 : index
    %36 = vector.load %arg7[%c0_20, %c24] : memref<144x36xf32, #tpu.memory_space<vmem>>, vector<144x4xf32>
    tpu.vector_store %arg7[%c0_20, %c24], %35 {strides = array<i32>} : memref<144x36xf32, #tpu.memory_space<vmem>>, vector<144x4xf32>,
    %c37_i32 = arith.constant 37 : i32
    %37 = arith.addi %1, %c37_i32 : i32
    %c0_21 = arith.constant 0 : index
    %38 = arith.index_cast %37 : i32 to index
    %c0_22 = arith.constant 0 : index
    %39 = vector.load %arg3[%c0_21, %38, %c0_22] : memref<1x326x4xf32, #tpu.memory_space<vmem>>, vector<1x144x4xf32>
    %40 = vector.shape_cast %39 : vector<1x144x4xf32> to vector<144x4xf32>
    %c0_23 = arith.constant 0 : index
    %c28 = arith.constant 28 : index
    %41 = vector.load %arg7[%c0_23, %c28] : memref<144x36xf32, #tpu.memory_space<vmem>>, vector<144x4xf32>
    tpu.vector_store %arg7[%c0_23, %c28], %40 {strides = array<i32>} : memref<144x36xf32, #tpu.memory_space<vmem>>, vector<144x4xf32>,
    %c38_i32 = arith.constant 38 : i32
    %42 = arith.addi %1, %c38_i32 : i32
    %c0_24 = arith.constant 0 : index
    %43 = arith.index_cast %42 : i32 to index
    %c0_25 = arith.constant 0 : index
    %44 = vector.load %arg3[%c0_24, %43, %c0_25] : memref<1x326x4xf32, #tpu.memory_space<vmem>>, vector<1x144x4xf32>
    %45 = vector.shape_cast %44 : vector<1x144x4xf32> to vector<144x4xf32>
    %c0_26 = arith.constant 0 : index
    %c32 = arith.constant 32 : index
    %46 = vector.load %arg7[%c0_26, %c32] : memref<144x36xf32, #tpu.memory_space<vmem>>, vector<144x4xf32>
    tpu.vector_store %arg7[%c0_26, %c32], %45 {strides = array<i32>} : memref<144x36xf32, #tpu.memory_space<vmem>>, vector<144x4xf32>,
    %c0_27 = arith.constant 0 : index
    %c0_28 = arith.constant 0 : index
    %47 = vector.load %arg7[%c0_27, %c0_28] : memref<144x36xf32, #tpu.memory_space<vmem>>, vector<144x36xf32>
    %c0_29 = arith.constant 0 : index
    %c0_30 = arith.constant 0 : index
    %48 = vector.load %arg4[%c0_29, %c0_30] : memref<36x128xf32, #tpu.memory_space<vmem>>, vector<36x128xf32>
    %cst = arith.constant dense<0.000000e+00> : vector<144x128xf32>
    %49 = tpu.matmul %47, %48, %cst {dimension_numbers = #tpu.dot_dimension_numbers<[1], [0], [0], [1], [0, 0, 1, 1], [], []>} : vector<144x36xf32>, vector<36x128xf32>, vector<144x128xf32> -> vector<144x128xf32>
    %c0_31 = arith.constant 0 : index
    %c0_32 = arith.constant 0 : index
    %50 = vector.load %arg5[%c0_31, %c0_32] : memref<1x128xf32, #tpu.memory_space<vmem>>, vector<1x128xf32>
    %51 = vector.broadcast %50 : vector<1x128xf32> to vector<144x128xf32>
    %52 = arith.addf %49, %51 : vector<144x128xf32>
    %c0_33 = arith.constant 0 : index
    %c0_34 = arith.constant 0 : index
    %c0_35 = arith.constant 0 : index
    %53 = vector.load %arg6[%c0_33, %c0_34, %c0_35] : memref<1x144x128xf32, #tpu.memory_space<vmem>>, vector<1x144x128xf32>
    %54 = vector.shape_cast %53 : vector<1x144x128xf32> to vector<144x128xf32>
    %55 = vector.shape_cast %52 : vector<144x128xf32> to vector<1x144x128xf32>
    tpu.vector_store %arg6[%c0_33, %c0_34, %c0_35], %55 {strides = array<i32>} : memref<1x144x128xf32, #tpu.memory_space<vmem>>, vector<1x144x128xf32>,
    return
  }
  func.func @transform_0(%arg0: i32, %arg1: i32, %arg2: i32) -> (i32, i32, i32) {
    %c0_i32 = arith.constant 0 : i32
    %c0_i32_0 = arith.constant 0 : i32
    %c0_i32_1 = arith.constant 0 : i32
    return %arg0, %c0_i32, %c0_i32_0 : i32, i32, i32
  }
  func.func @transform_1(%arg0: i32, %arg1: i32, %arg2: i32) -> (i32, i32) {
    %c0_i32 = arith.constant 0 : i32
    %c0_i32_0 = arith.constant 0 : i32
    return %c0_i32, %arg2 : i32, i32
  }
  func.func @transform_2(%arg0: i32, %arg1: i32, %arg2: i32) -> (i32, i32) {
    %c0_i32 = arith.constant 0 : i32
    %c0_i32_0 = arith.constant 0 : i32
    return %c0_i32, %arg2 : i32, i32
  }
  func.func @transform_3(%arg0: i32, %arg1: i32, %arg2: i32) -> (i32, i32, i32) {
    %c0_i32 = arith.constant 0 : i32
    return %arg0, %arg1, %arg2 : i32, i32, i32
  }
}

</mosaic_0001>

<bundles_post_ra>
// kernel: _conv2d_fr3d_forward.1
= control target key start
LH: loop header
LB: loop body
LE: loop exit
PB: predicated region body
PF: predicated region fallthrough
CT: control target
= control target key end

     0   :  { %s1800_s12 = smov 0   ;;  %s1802_s13 = smov 0   ;;  %s2469_s0 = inlined_call_operand.vmem [shape: f32[2,326,4], index: 0, kind: input, shape index: {}]   ;;  %s2470_s1 = inlined_call_operand.vmem [shape: f32[36,128], index: 1, kind: input, shape index: {}]   ;;  %s2471_s2 = inlined_call_operand.vmem [shape: f32[1,128], index: 2, kind: input, shape index: {}]   ;;  %s2472_s3 = inlined_call_operand.vmem [shape: f32[2,288,128], index: 3, kind: output, shape index: {}]  }
   0x1   :  { %s1804_s14 = smov 0   ;;  %s1806_s15 = smov 0  }
   0x2   :  { %s1808_s16 = smov 0  }
   0x3 LB: > { %s28_s17 = sadd.s32 1, %s1762_s14  ;;  %s32_s18 = sadd.s32 1, %s1766_s15  ;;  %s1770_s16 = sphi %s1808_s16, %s13_s16   ;;  %s1766_s15 = sphi %s1806_s15, %s2476_s15   ;;  %s1762_s14 = sphi %s1804_s14, %s2475_s14   ;;  %s1758_s13 = sphi %s1802_s13, %s2474_s13   ;;  %s1754_s12 = sphi %s1800_s12, %s2473_s12  }
   0x4   : > { %p30_p0 = scmp.ge.s32.totalorder %s28_s17, 2  ;;  %p1498_p1 = scmp.ge.s32.totalorder %s1770_s16, 1 }
   0x5   : > { %p177_p2 = scmp.lt.s32.totalorder %s1770_s16, 5 }
   0x6   : > { %s2478_s17 = smov (%p30_p0, %s28_s17), 0  ;;  %s2480_s18 = smov (!%p30_p0, %s32_s18), %s1766_s15 }
   0x7   : > { %p178_p3 = pnand %p1498_p1, %p177_p2  ;;  %p34_p4 = scmp.ge.s32.totalorder %s2480_s18, 2 }
   0x8   : > { %p215_p5 = scmp.lt.s32.totalorder (!%p178_p3), %s1758_s13, 1  ;;  %s240_s19 = smul.u32 (!%p178_p3), 144, %s1754_s12 }
   0x9   : > { %s2482_s18 = smov (%p34_p4, %s2480_s18), 0  ;;  %181 = sbr.rel (%p178_p3) target bundleno = 650 (0x28a), region = 32 }
   0xa   : > { %s1772_s25 = smov (!%p178_p3), 4   ;;  %s1773_s26 = smov (!%p178_p3), 8  }
   0xb   : > { %s1774_s27 = smov (!%p178_p3), 12   ;;  %s1775_s28 = smov (!%p178_p3), 16  }
   0xc   : > { %s1776_s29 = smov (!%p178_p3), 24   ;;  %s1777_s30 = smov (!%p178_p3), 20  }
   0xd   : > { %s1778_s4 = smov (!%p178_p3), 28   ;;  %s1779_s5 = smov (!%p178_p3), 32  }
   0xe   : > { %s2484_s13 = smov (!%p215_p5, %s1758_s13), 1  ;;  %vm260_vm0 = vcmask 31744   ;;  %vm371_vm1 = vcmask 64544   ;;  %vm482_vm2 = vcmask 97344   ;;  %vm593_vm3 = vcmask 130144  }
   0xf   : > { %s1681_s20 = smul.u32 328, %s2484_s13  ;;  %vm704_vm4 = vcmask 162944   ;;  %vm1249_vm5 = vcmask 1043456   ;;  %vm815_vm6 = vcmask 195744   ;;  %vm926_vm7 = vcmask 228544  }
  0x10   : > { %vm1037_vm8 = vcmask 261344   ;;  %vm1148_vm9 = vcmask 294144   ;;  %vm1194_vm10 = vcmask 293888  }
  0x11   : > { %s219_s23 = scalar_lea.vmem %s2469_s0, %s1681_s20 }
  0x12   : > { %s1839_s24 = scalar_lea.vmem %s219_s23, %s240_s19  ;;  %s227_s23 = smul.u32 18, %s1754_s12 }
  0x13   : > { %v1503_v0 = vld [vmem:[%s1839_s24 + $0x11] sm:$0xff]  ;;  %v1501_v1 = vld [vmem:[%s1839_s24 + $0x1] sm:$0xff]  ;;  %v1504_v3 = vld [vmem:[%s1839_s24 + $0x19] sm:$0xff] }
  0x14   : > { %321 = vrot.lane.b32.xlu1 %v1503_v0, %s1772_s25  ;;  %317 = vrot.lane.b32.xlu0 %v1501_v1, %s1772_s25  ;;  %v1505_v2 = vld [vmem:[%s1839_s24 + $0x21] sm:$0xff]  ;;  %v1502_v4 = vld [vmem:[%s1839_s24 + $0x9] sm:$0xff]  ;;  %p230_p6 = scmp.lt.s32.totalorder %s227_s23, 35 }
  0x15   : > { %325 = vrot.lane.b32.xlu2 %v1505_v2, %s1772_s25  ;;  %v1506_v5 = vld [vmem:[%s1839_s24 + $0x29] sm:$0xff]  ;;  %v1508_v6 = vld [vmem:[%s1839_s24 + $0x39] sm:$0xff]  ;;  %v1507_v7 = vld [vmem:[%s1839_s24 + $0x31] sm:$0xff] }
  0x16   : > { %v1509_v8 = vld [vmem:[%s1839_s24 + $0x41] sm:$0xff]  ;;  %v1511_v9 = vld [vmem:[%s1839_s24 + $0x51] sm:$0xff]  ;;  %v1510_v10 = vld [vmem:[%s1839_s24 + $0x49] sm:$0xff]  ;;  %s2486_s23 = smov (!%p230_p6, %s227_s23), 35 }
  0x17   : > { %v1512_v11 = vld [vmem:[%s1839_s24 + $0x59] sm:$0xff]  ;;  %v1514_v12 = vld [vmem:[%s1839_s24 + $0x69] sm:$0xff]  ;;  %v1513_v13 = vld [vmem:[%s1839_s24 + $0x61] sm:$0xff] }
  0x18   : > { %v1515_v14 = vld [vmem:[%s1839_s24 + $0x71] sm:$0xff]  ;;  %v1517_v15 = vld [vmem:[%s1839_s24 + $0x81] sm:$0xff]  ;;  %v1516_v16 = vld [vmem:[%s1839_s24 + $0x79] sm:$0xff] }
  0x19   : > { %v1518_v17 = vld [vmem:[%s1839_s24 + $0x89] sm:$0xff]  ;;  %v1521_v20 = vld [vmem:[%s1839_s24 + $0x12] sm:$0xff]  ;;  %v1522_v22 = vld [vmem:[%s1839_s24 + $0x1a] sm:$0xff] }
  0x1a   : > { %v1520_v18 = vld [vmem:[%s1839_s24 + $0xa] sm:$0xff]  ;;  %v1519_v19 = vld [vmem:[%s1839_s24 + $0x2] sm:$0xff]  ;;  %v1526_v24 = vld [vmem:[%s1839_s24 + $0x3a] sm:$0xff] }
  0x1b   : > { %v1523_v21 = vld [vmem:[%s1839_s24 + $0x22] sm:$0xff]  ;;  %v1524_v23 = vld [vmem:[%s1839_s24 + $0x2a] sm:$0xff]  ;;  %v1525_v25 = vld [vmem:[%s1839_s24 + $0x32] sm:$0xff] }
  0x1c   : > { %323 = vrot.lane.b32.xlu1 %v1504_v3, %s1772_s25  ;;  %319 = vrot.lane.b32.xlu0 %v1502_v4, %s1772_s25  ;;  %v1527_v26 = vld [vmem:[%s1839_s24 + $0x42] sm:$0xff]  ;;  %v1896_v27 = vld [vmem:[%s1839_s24 + $0x52] sm:$0xff] }
  0x1d   : > { %327 = vrot.lane.b32.xlu2 %v1506_v5, %s1772_s25  ;;  %v1528_v28 = vld [vmem:[%s1839_s24 + $0x4a] sm:$0xff]  ;;  %v1903_v29 = vld [vmem:[%s1839_s24 + $0x5a] sm:$0xff]  ;;  %v1911_v31 = vld [vmem:[%s1839_s24 + $0x62] sm:$0xff] }
  0x1e   : > { %v1908_v30 = vld [vmem:[%s1839_s24 + $0x6a] sm:$0xff]  ;;  %v1918_v32 = vld [vmem:[%s1839_s24 + $0x72] sm:$0xff]  ;;  %v242_v33 = vld [vmem:[%s1839_s24] sm:$0xff] }
  0x1f   : > { %v244_v34 = vld [vmem:[%s1839_s24 + $0x10] sm:$0xff]  ;;  %261 = vst.msk [vmem:[#allocation2] sm:$0xff] %vm260_vm0, %v242_v33  ;;  %v246_v35 = vld [vmem:[%s1839_s24 + $0x20] sm:$0xff]  ;;  %v245_v39 = vld [vmem:[%s1839_s24 + $0x18] sm:$0xff] }
  0x20   : > { %263 = vst.msk [vmem:[#allocation2 + $0x10] sm:$0xff] %vm260_vm0, %v244_v34  ;;  %v1929_v36 = vld [vmem:[%s1839_s24 + $0x82] sm:$0xff]  ;;  %v1932_v37 = vld [vmem:[%s1839_s24 + $0x7a] sm:$0xff]  ;;  %v1939_v38 = vld [vmem:[%s1839_s24 + $0x8a] sm:$0xff] }
  0x21   : > { %265 = vst.msk [vmem:[#allocation2 + $0x20] sm:$0xff] %vm260_vm0, %v246_v35  ;;  %v243_v40 = vld [vmem:[%s1839_s24 + $0x8] sm:$0xff]  ;;  %v249_v43 = vld [vmem:[%s1839_s24 + $0x38] sm:$0xff]  ;;  %v248_v44 = vld [vmem:[%s1839_s24 + $0x30] sm:$0xff] }
  0x22   : > { %264 = vst.msk [vmem:[#allocation2 + $0x18] sm:$0xff] %vm260_vm0, %v245_v39  ;;  %v247_v41 = vld [vmem:[%s1839_s24 + $0x28] sm:$0xff]  ;;  %v250_v45 = vld [vmem:[%s1839_s24 + $0x40] sm:$0xff]  ;;  %v252_v47 = vld [vmem:[%s1839_s24 + $0x50] sm:$0xff] }
  0x23   : > { %262 = vst.msk [vmem:[#allocation2 + $0x8] sm:$0xff] %vm260_vm0, %v243_v40  ;;  %v251_v48 = vld [vmem:[%s1839_s24 + $0x48] sm:$0xff]  ;;  %v253_v49 = vld [vmem:[%s1839_s24 + $0x58] sm:$0xff]  ;;  %v254_v54 = vld [vmem:[%s1839_s24 + $0x60] sm:$0xff] }
  0x24   : > { %331 = vrot.lane.b32.xlu1 %v1508_v6, %s1772_s25  ;;  %329 = vrot.lane.b32.xlu0 %v1507_v7, %s1772_s25  ;;  %266 = vst.msk [vmem:[#allocation2 + $0x28] sm:$0xff] %vm260_vm0, %v247_v41  ;;  %v255_v53 = vld [vmem:[%s1839_s24 + $0x68] sm:$0xff]  ;;  %v256_v56 = vld [vmem:[%s1839_s24 + $0x70] sm:$0xff] }
  0x25   : > { %333 = vrot.lane.b32.xlu2 %v1509_v8, %s1772_s25  ;;  %268 = vst.msk [vmem:[#allocation2 + $0x38] sm:$0xff] %vm260_vm0, %v249_v43  ;;  %v258_v59 = vld [vmem:[%s1839_s24 + $0x80] sm:$0xff]  ;;  %v257_v60 = vld [vmem:[%s1839_s24 + $0x78] sm:$0xff]  ;;  %v259_v62 = vld [vmem:[%s1839_s24 + $0x88] sm:$0xff] }
  0x26   : > { %267 = vst.msk [vmem:[#allocation2 + $0x30] sm:$0xff] %vm260_vm0, %v248_v44  ;;  %v1553_v1 = vld [vmem:[%s1839_s24 + $0x92] sm:$0xff]  ;;  %v1554_v3 = vld [vmem:[%s1839_s24 + $0x9a] sm:$0xff]  ;;  %v1569_v33 = vld [vmem:[%s1839_s24 + $0x83] sm:$0xff] }
  0x27   : > { %269 = vst.msk [vmem:[#allocation2 + $0x40] sm:$0xff] %vm260_vm0, %v250_v45  ;;  %v1556_v6 = vld [vmem:[%s1839_s24 + $0x1b] sm:$0xff]  ;;  %v1555_v7 = vld [vmem:[%s1839_s24 + $0x13] sm:$0xff] }
  0x28   : > { %271 = vst.msk [vmem:[#allocation2 + $0x50] sm:$0xff] %vm260_vm0, %v252_v47  ;;  %v1572_v39 = vld [vmem:[%s1839_s24 + $0x9b] sm:$0xff]  ;;  %v1618_v45 = vld [vmem:[%s1839_s24 + $0x6d] sm:$0xff] }
  0x29   : > { %270 = vst.msk [vmem:[#allocation2 + $0x48] sm:$0xff] %vm260_vm0, %v251_v48  ;;  %v2073_v43 = vld [vmem:[%s1839_s24 + $0x5c] sm:$0xff]  ;;  %v2085_v48 = vld [vmem:[%s1839_s24 + $0x34] sm:$0xff] }
  0x2a   : > { %272 = vst.msk [vmem:[#allocation2 + $0x58] sm:$0xff] %vm260_vm0, %v253_v49  ;;  %v1636_v49 = vld [vmem:[%s1839_s24 + $0x6e] sm:$0xff] }
  0x2b   : > { %274 = vst.msk [vmem:[#allocation2 + $0x68] sm:$0xff] %vm260_vm0, %v255_v53 }
  0x2c   : > { %337 = vrot.lane.b32.xlu1 %v1511_v9, %s1772_s25  ;;  %335 = vrot.lane.b32.xlu0 %v1510_v10, %s1772_s25  ;;  %273 = vst.msk [vmem:[#allocation2 + $0x60] sm:$0xff] %vm260_vm0, %v254_v54  ;;  %v1557_v9 = vld [vmem:[%s1839_s24 + $0x23] sm:$0xff] }
  0x2d   : > { %339 = vrot.lane.b32.xlu2 %v1512_v11, %s1772_s25  ;;  %275 = vst.msk [vmem:[#allocation2 + $0x70] sm:$0xff] %vm260_vm0, %v256_v56  ;;  %v2100_v54 = vld [vmem:[%s1839_s24 + $0x64] sm:$0xff] }
  0x2e   : > { %277 = vst.msk [vmem:[#allocation2 + $0x80] sm:$0xff] %vm260_vm0, %v258_v59 }
  0x2f   : > { %276 = vst.msk [vmem:[#allocation2 + $0x78] sm:$0xff] %vm260_vm0, %v257_v60  ;;  %v2115_v60 = vld [vmem:[%s1839_s24 + $0x74] sm:$0xff] }
  0x30   : > { %278 = vst.msk [vmem:[#allocation2 + $0x88] sm:$0xff] %vm260_vm0, %v259_v62 }
  0x34   : > { %343 = vrot.lane.b32.xlu1 %v1514_v12, %s1772_s25  ;;  %341 = vrot.lane.b32.xlu0 %v1513_v13, %s1772_s25  ;;  %v1559_v12 = vld [vmem:[%s1839_s24 + $0x33] sm:$0xff]  ;;  %v1558_v13 = vld [vmem:[%s1839_s24 + $0x2b] sm:$0xff] }
  0x35   : > { %345 = vrot.lane.b32.xlu2 %v1515_v14, %s1772_s25 }
  0x3c   : > { %349 = vrot.lane.b32.xlu1 %v1517_v15, %s1772_s25  ;;  %347 = vrot.lane.b32.xlu0 %v1516_v16, %s1772_s25  ;;  %v1560_v15 = vld [vmem:[%s1839_s24 + $0x3b] sm:$0xff] }
  0x3d   : > { %351 = vrot.lane.b32.xlu2 %v1518_v17, %s1772_s25 }
  0x44   : > { %430 = vrot.lane.b32.xlu1 %v1520_v18, %s1773_s26  ;;  %428 = vrot.lane.b32.xlu0 %v1519_v19, %s1773_s26  ;;  %v1562_v18 = vld [vmem:[%s1839_s24 + $0x4b] sm:$0xff]  ;;  %v1561_v19 = vld [vmem:[%s1839_s24 + $0x43] sm:$0xff] }
  0x45   : > { %432 = vrot.lane.b32.xlu2 %v1521_v20, %s1773_s26 }
  0x4c   : > { %436 = vrot.lane.b32.xlu1 %v1523_v21, %s1773_s26  ;;  %434 = vrot.lane.b32.xlu0 %v1522_v22, %s1773_s26 }
  0x4d   : > { %438 = vrot.lane.b32.xlu2 %v1524_v23, %s1773_s26 }
  0x54   : > { %442 = vrot.lane.b32.xlu1 %v1526_v24, %s1773_s26  ;;  %440 = vrot.lane.b32.xlu0 %v1525_v25, %s1773_s26 }
  0x55   : > { %444 = vrot.lane.b32.xlu2 %v1527_v26, %s1773_s26 }
  0x5c   : > { %448 = vrot.lane.b32.xlu1 %v1896_v27, %s1773_s26  ;;  %446 = vrot.lane.b32.xlu0 %v1528_v28, %s1773_s26 }
  0x5d   : > { %450 = vrot.lane.b32.xlu2 %v1903_v29, %s1773_s26 }
  0x64   : > { %454 = vrot.lane.b32.xlu1 %v1908_v30, %s1773_s26  ;;  %452 = vrot.lane.b32.xlu0 %v1911_v31, %s1773_s26 }
  0x65   : > { %456 = vrot.lane.b32.xlu2 %v1918_v32, %s1773_s26 }
  0x6c   : > { %460 = vrot.lane.b32.xlu1 %v1929_v36, %s1773_s26  ;;  %458 = vrot.lane.b32.xlu0 %v1932_v37, %s1773_s26 }
  0x6d   : > { %462 = vrot.lane.b32.xlu2 %v1939_v38, %s1773_s26 }
  0x6f   : > { %v326_v42 = vpop.permute.xlu2 %325 }
  0x70   : > { %376 = vst.msk [vmem:[#allocation2 + $0x20] sm:$0xff] %vm371_vm1, %v326_v42  ;;  %v2070_v42 = vld [vmem:[%s1839_s24 + $0x6c] sm:$0xff] }
  0x74   : > { %541 = vrot.lane.b32.xlu1 %v1522_v22, %s1774_s27  ;;  %539 = vrot.lane.b32.xlu0 %v1521_v20, %s1774_s27 }
  0x75   : > { %543 = vrot.lane.b32.xlu2 %v1523_v21, %s1774_s27  ;;  %v1563_v21 = vld [vmem:[%s1839_s24 + $0x53] sm:$0xff] }
  0x77   : > { %v328_v46 = vpop.permute.xlu2 %327 }
  0x78   : > { %377 = vst.msk [vmem:[#allocation2 + $0x28] sm:$0xff] %vm371_vm1, %v328_v46 }
  0x7c   : > { %547 = vrot.lane.b32.xlu1 %v1525_v25, %s1774_s27  ;;  %545 = vrot.lane.b32.xlu0 %v1524_v23, %s1774_s27  ;;  %v1564_v25 = vld [vmem:[%s1839_s24 + $0x5b] sm:$0xff] }
  0x7d   : > { %549 = vrot.lane.b32.xlu2 %v1526_v24, %s1774_s27  ;;  %v1565_v24 = vld [vmem:[%s1839_s24 + $0x63] sm:$0xff] }
  0x7f   : > { %v334_v50 = vpop.permute.xlu2 %333 }
  0x80   : > { %380 = vst.msk [vmem:[#allocation2 + $0x40] sm:$0xff] %vm371_vm1, %v334_v50 }
  0x84   : > { %553 = vrot.lane.b32.xlu1 %v1528_v28, %s1774_s27  ;;  %551 = vrot.lane.b32.xlu0 %v1527_v26, %s1774_s27 }
  0x85   : > { %555 = vrot.lane.b32.xlu2 %v1896_v27, %s1774_s27  ;;  %v1566_v27 = vld [vmem:[%s1839_s24 + $0x6b] sm:$0xff] }
  0x86   : > { %v322_v51 = vpop.permute.xlu1 %321  ;;  %v318_v52 = vpop.permute.xlu0 %317 }
  0x87   : > { %374 = vst.msk [vmem:[#allocation2 + $0x10] sm:$0xff] %vm371_vm1, %v322_v51  ;;  %v340_v55 = vpop.permute.xlu2 %339  ;;  %v2093_v51 = vld [vmem:[%s1839_s24 + $0x44] sm:$0xff] }
  0x88   : > { %372 = vst.msk [vmem:[#allocation2] sm:$0xff] %vm371_vm1, %v318_v52 }
  0x89   : > { %383 = vst.msk [vmem:[#allocation2 + $0x58] sm:$0xff] %vm371_vm1, %v340_v55  ;;  %v2103_v55 = vld [vmem:[%s1839_s24 + $0x84] sm:$0xff] }
  0x8c   : > { %559 = vrot.lane.b32.xlu1 %v1911_v31, %s1774_s27  ;;  %557 = vrot.lane.b32.xlu0 %v1903_v29, %s1774_s27  ;;  %v1567_v31 = vld [vmem:[%s1839_s24 + $0x73] sm:$0xff] }
  0x8d   : > { %561 = vrot.lane.b32.xlu2 %v1908_v30, %s1774_s27  ;;  %v1568_v30 = vld [vmem:[%s1839_s24 + $0x7b] sm:$0xff] }
  0x8e   : > { %v324_v57 = vpop.permute.xlu1 %323  ;;  %v320_v58 = vpop.permute.xlu0 %319 }
  0x8f   : > { %375 = vst.msk [vmem:[#allocation2 + $0x18] sm:$0xff] %vm371_vm1, %v324_v57  ;;  %v346_v61 = vpop.permute.xlu2 %345  ;;  %v1613_v57 = vld [vmem:[%s1839_s24 + $0x45] sm:$0xff] }
  0x90   : > { %373 = vst.msk [vmem:[#allocation2 + $0x8] sm:$0xff] %vm371_vm1, %v320_v58 }
  0x91   : > { %386 = vst.msk [vmem:[#allocation2 + $0x70] sm:$0xff] %vm371_vm1, %v346_v61  ;;  %v2118_v61 = vld [vmem:[%s1839_s24 + $0x94] sm:$0xff] }
  0x94   : > { %565 = vrot.lane.b32.xlu1 %v1932_v37, %s1774_s27  ;;  %563 = vrot.lane.b32.xlu0 %v1918_v32, %s1774_s27  ;;  %v1570_v37 = vld [vmem:[%s1839_s24 + $0x8b] sm:$0xff] }
  0x95   : > { %567 = vrot.lane.b32.xlu2 %v1929_v36, %s1774_s27  ;;  %v1571_v36 = vld [vmem:[%s1839_s24 + $0x93] sm:$0xff] }
  0x96   : > { %v332_v63 = vpop.permute.xlu1 %331  ;;  %v330_v0 = vpop.permute.xlu0 %329 }
  0x97   : > { %379 = vst.msk [vmem:[#allocation2 + $0x38] sm:$0xff] %vm371_vm1, %v332_v63  ;;  %v352_v2 = vpop.permute.xlu2 %351  ;;  %v1631_v63 = vld [vmem:[%s1839_s24 + $0x46] sm:$0xff] }
  0x98   : > { %378 = vst.msk [vmem:[#allocation2 + $0x30] sm:$0xff] %vm371_vm1, %v330_v0 }
  0x99   : > { %389 = vst.msk [vmem:[#allocation2 + $0x88] sm:$0xff] %vm371_vm1, %v352_v2  ;;  %v1619_v2 = vld [vmem:[%s1839_s24 + $0x75] sm:$0xff] }
  0x9c   : > { %571 = vrot.lane.b32.xlu1 %v1553_v1, %s1774_s27  ;;  %569 = vrot.lane.b32.xlu0 %v1939_v38, %s1774_s27 }
  0x9d   : > { %573 = vrot.lane.b32.xlu2 %v1554_v3, %s1774_s27  ;;  %v1623_v3 = vld [vmem:[%s1839_s24 + $0x95] sm:$0xff] }
  0x9e   : > { %v338_v4 = vpop.permute.xlu1 %337  ;;  %v336_v5 = vpop.permute.xlu0 %335 }
  0x9f   : > { %382 = vst.msk [vmem:[#allocation2 + $0x50] sm:$0xff] %vm371_vm1, %v338_v4  ;;  %v433_v8 = vpop.permute.xlu2 %432 }
  0xa0   : > { %381 = vst.msk [vmem:[#allocation2 + $0x48] sm:$0xff] %vm371_vm1, %v336_v5  ;;  %v1637_v5 = vld [vmem:[%s1839_s24 + $0x76] sm:$0xff] }
  0xa1   : > { %485 = vst.msk [vmem:[#allocation2 + $0x10] sm:$0xff] %vm482_vm2, %v433_v8  ;;  %v1641_v8 = vld [vmem:[%s1839_s24 + $0x96] sm:$0xff] }
  0xa4   : > { %652 = vrot.lane.b32.xlu1 %v1556_v6, %s1775_s28  ;;  %650 = vrot.lane.b32.xlu0 %v1555_v7, %s1775_s28 }
  0xa5   : > { %654 = vrot.lane.b32.xlu2 %v1557_v9, %s1775_s28  ;;  %v1573_v9 = vld [vmem:[%s1839_s24 + $0x14] sm:$0xff] }
  0xa6   : > { %v344_v10 = vpop.permute.xlu1 %343  ;;  %v342_v11 = vpop.permute.xlu0 %341 }
  0xa7   : > { %385 = vst.msk [vmem:[#allocation2 + $0x68] sm:$0xff] %vm371_vm1, %v344_v10  ;;  %v439_v14 = vpop.permute.xlu2 %438 }
  0xa8   : > { %384 = vst.msk [vmem:[#allocation2 + $0x60] sm:$0xff] %vm371_vm1, %v342_v11  ;;  %v2144_v11 = vld [vmem:[%s1839_s24 + $0x3c] sm:$0xff] }
  0xa9   : > { %488 = vst.msk [vmem:[#allocation2 + $0x28] sm:$0xff] %vm482_vm2, %v439_v14  ;;  %v2151_v14 = vld [vmem:[%s1839_s24 + $0x24] sm:$0xff] }
  0xac   : > { %658 = vrot.lane.b32.xlu1 %v1559_v12, %s1775_s28  ;;  %656 = vrot.lane.b32.xlu0 %v1558_v13, %s1775_s28 }
  0xad   : > { %660 = vrot.lane.b32.xlu2 %v1560_v15, %s1775_s28  ;;  %v2154_v15 = vld [vmem:[%s1839_s24 + $0x4c] sm:$0xff] }
  0xae   : > { %v350_v16 = vpop.permute.xlu1 %349  ;;  %v348_v17 = vpop.permute.xlu0 %347 }
  0xaf   : > { %388 = vst.msk [vmem:[#allocation2 + $0x80] sm:$0xff] %vm371_vm1, %v350_v16  ;;  %v445_v20 = vpop.permute.xlu2 %444 }
  0xb0   : > { %387 = vst.msk [vmem:[#allocation2 + $0x78] sm:$0xff] %vm371_vm1, %v348_v17 }
  0xb1   : > { %491 = vst.msk [vmem:[#allocation2 + $0x40] sm:$0xff] %vm482_vm2, %v445_v20  ;;  %v1609_v20 = vld [vmem:[%s1839_s24 + $0x25] sm:$0xff] }
  0xb4   : > { %664 = vrot.lane.b32.xlu1 %v1562_v18, %s1775_s28  ;;  %662 = vrot.lane.b32.xlu0 %v1561_v19, %s1775_s28  ;;  %v2166_v19 = vld [vmem:[%s1839_s24 + $0x8c] sm:$0xff] }
  0xb5   : > { %666 = vrot.lane.b32.xlu2 %v1563_v21, %s1775_s28 }
  0xb6   : > { %v431_v22 = vpop.permute.xlu1 %430  ;;  %v429_v23 = vpop.permute.xlu0 %428 }
  0xb7   : > { %484 = vst.msk [vmem:[#allocation2 + $0x8] sm:$0xff] %vm482_vm2, %v431_v22  ;;  %v451_v26 = vpop.permute.xlu2 %450  ;;  %v1614_v22 = vld [vmem:[%s1839_s24 + $0x4d] sm:$0xff] }
  0xb8   : > { %483 = vst.msk [vmem:[#allocation2] sm:$0xff] %vm482_vm2, %v429_v23 }
  0xb9   : > { %494 = vst.msk [vmem:[#allocation2 + $0x58] sm:$0xff] %vm482_vm2, %v451_v26  ;;  %v2181_v26 = vld [vmem:[%s1839_s24 + $0x9c] sm:$0xff] }
  0xbc   : > { %670 = vrot.lane.b32.xlu1 %v1565_v24, %s1775_s28  ;;  %668 = vrot.lane.b32.xlu0 %v1564_v25, %s1775_s28  ;;  %v2178_v25 = vld [vmem:[%s1839_s24 + $0x7c] sm:$0xff] }
  0xbd   : > { %672 = vrot.lane.b32.xlu2 %v1566_v27, %s1775_s28 }
  0xbe   : > { %v437_v28 = vpop.permute.xlu1 %436  ;;  %v435_v29 = vpop.permute.xlu0 %434 }
  0xbf   : > { %487 = vst.msk [vmem:[#allocation2 + $0x20] sm:$0xff] %vm482_vm2, %v437_v28  ;;  %v457_v32 = vpop.permute.xlu2 %456  ;;  %v1627_v28 = vld [vmem:[%s1839_s24 + $0x26] sm:$0xff] }
  0xc0   : > { %486 = vst.msk [vmem:[#allocation2 + $0x18] sm:$0xff] %vm482_vm2, %v435_v29 }
  0xc1   : > { %497 = vst.msk [vmem:[#allocation2 + $0x70] sm:$0xff] %vm482_vm2, %v457_v32  ;;  %v1620_v32 = vld [vmem:[%s1839_s24 + $0x7d] sm:$0xff] }
  0xc4   : > { %676 = vrot.lane.b32.xlu1 %v1568_v30, %s1775_s28  ;;  %674 = vrot.lane.b32.xlu0 %v1567_v31, %s1775_s28  ;;  %v1632_v31 = vld [vmem:[%s1839_s24 + $0x4e] sm:$0xff] }
  0xc5   : > { %678 = vrot.lane.b32.xlu2 %v1569_v33, %s1775_s28 }
  0xc6   : > { %v443_v34 = vpop.permute.xlu1 %442  ;;  %v441_v35 = vpop.permute.xlu0 %440 }
  0xc7   : > { %490 = vst.msk [vmem:[#allocation2 + $0x38] sm:$0xff] %vm482_vm2, %v443_v34  ;;  %v463_v38 = vpop.permute.xlu2 %462  ;;  %v1624_v34 = vld [vmem:[%s1839_s24 + $0x9d] sm:$0xff] }
  0xc8   : > { %489 = vst.msk [vmem:[#allocation2 + $0x30] sm:$0xff] %vm482_vm2, %v441_v35 }
  0xc9   : > { %500 = vst.msk [vmem:[#allocation2 + $0x88] sm:$0xff] %vm482_vm2, %v463_v38  ;;  %v1642_v38 = vld [vmem:[%s1839_s24 + $0x9e] sm:$0xff] }
  0xcc   : > { %682 = vrot.lane.b32.xlu1 %v1571_v36, %s1775_s28  ;;  %680 = vrot.lane.b32.xlu0 %v1570_v37, %s1775_s28  ;;  %v1638_v37 = vld [vmem:[%s1839_s24 + $0x7e] sm:$0xff] }
  0xcd   : > { %684 = vrot.lane.b32.xlu2 %v1572_v39, %s1775_s28 }
  0xce   : > { %v449_v40 = vpop.permute.xlu1 %448  ;;  %v447_v41 = vpop.permute.xlu0 %446 }
  0xcf   : > { %493 = vst.msk [vmem:[#allocation2 + $0x50] sm:$0xff] %vm482_vm2, %v449_v40  ;;  %v544_v44 = vpop.permute.xlu2 %543  ;;  %v1574_v40 = vld [vmem:[%s1839_s24 + $0x1c] sm:$0xff] }
  0xd0   : > { %492 = vst.msk [vmem:[#allocation2 + $0x48] sm:$0xff] %vm482_vm2, %v447_v41 }
  0xd1   : > { %596 = vst.msk [vmem:[#allocation2 + $0x10] sm:$0xff] %vm593_vm3, %v544_v44  ;;  %v2211_v44 = vld [vmem:[%s1839_s24 + $0x2c] sm:$0xff] }
  0xd4   : > { %890 = vrot.lane.b32.xlu1 %v2070_v42, %s1776_s29  ;;  %779 = vrot.lane.b32.xlu0 %v2073_v43, %s1777_s30 }
  0xd5   : > { %1001 = vrot.lane.b32.xlu2 %v1618_v45, %s1778_s4 }
  0xd6   : > { %v455_v46 = vpop.permute.xlu1 %454  ;;  %v453_v47 = vpop.permute.xlu0 %452 }
  0xd7   : > { %496 = vst.msk [vmem:[#allocation2 + $0x68] sm:$0xff] %vm482_vm2, %v455_v46  ;;  %v550_v50 = vpop.permute.xlu2 %549  ;;  %v2219_v46 = vld [vmem:[%s1839_s24 + $0x54] sm:$0xff] }
  0xd8   : > { %495 = vst.msk [vmem:[#allocation2 + $0x60] sm:$0xff] %vm482_vm2, %v453_v47  ;;  %v1189_v47 = vld [vmem:[%s2470_s1 + $0x20] sm:$0xf] }
  0xd9   : > { %599 = vst.msk [vmem:[#allocation2 + $0x28] sm:$0xff] %vm593_vm3, %v550_v50  ;;  %1667 = vmatpush.msk.msra.mxu2 %vm1249_vm5, %v1189_v47  ;;  %1666 = vmatpush.msk.msra.mxu1 %vm1249_vm5, %v1189_v47 }
  0xda   : > { %1668 = vmatpush.msk.msra.mxu3 %vm1249_vm5, %v1189_v47  ;;  %1645 = vmatpush.msk.msra.mxu0 %vm1249_vm5, %v1189_v47 }
  0xdc   : > { %769 = vrot.lane.b32.xlu1 %v2085_v48, %s1777_s30  ;;  %1112 = vrot.lane.b32.xlu0 %v1636_v49, %s1779_s5 }
  0xdd   : > { %880 = vrot.lane.b32.xlu2 %v2093_v51, %s1776_s29 }
  0xde   : > { %v461_v52 = vpop.permute.xlu1 %460  ;;  %v459_v53 = vpop.permute.xlu0 %458 }
  0xdf   : > { %499 = vst.msk [vmem:[#allocation2 + $0x80] sm:$0xff] %vm482_vm2, %v461_v52  ;;  %v556_v56 = vpop.permute.xlu2 %555 }
  0xe0   : > { %498 = vst.msk [vmem:[#allocation2 + $0x78] sm:$0xff] %vm482_vm2, %v459_v53  ;;  %v1187_v53 = vld [vmem:[%s2470_s1 + $0x10] sm:$0xff] }
  0xe1   : > { %602 = vst.msk [vmem:[#allocation2 + $0x40] sm:$0xff] %vm593_vm3, %v556_v56  ;;  %v1186_v56 = vld [vmem:[%s2470_s1 + $0x8] sm:$0xff] }
  0xe4   : > { %781 = vrot.lane.b32.xlu0 %v2100_v54, %s1777_s30  ;;  %789 = vrot.lane.b32.xlu1 %v2103_v55, %s1777_s30 }
  0xe5   : > { %991 = vrot.lane.b32.xlu2 %v1613_v57, %s1778_s4  ;;  %v1610_v57 = vld [vmem:[%s1839_s24 + $0x2d] sm:$0xff] }
  0xe6   : > { %v542_v58 = vpop.permute.xlu1 %541  ;;  %v540_v59 = vpop.permute.xlu0 %539 }
  0xe7   : > { %595 = vst.msk [vmem:[#allocation2 + $0x8] sm:$0xff] %vm593_vm3, %v542_v58  ;;  %v562_v62 = vpop.permute.xlu2 %561  ;;  %v1185_v58 = vld [vmem:[%s2470_s1] sm:$0xff] }
  0xe8   : > { %594 = vst.msk [vmem:[#allocation2] sm:$0xff] %vm593_vm3, %v540_v59 }
  0xe9   : > { %605 = vst.msk [vmem:[#allocation2 + $0x58] sm:$0xff] %vm593_vm3, %v562_v62 }
  0xec   : > { %892 = vrot.lane.b32.xlu0 %v2115_v60, %s1776_s29  ;;  %900 = vrot.lane.b32.xlu1 %v2118_v61, %s1776_s29 }
  0xed   : > { %1102 = vrot.lane.b32.xlu2 %v1631_v63, %s1779_s5  ;;  %v1607_v63 = vld [vmem:[%s1839_s24 + $0xa4] sm:$0xff] }
  0xee   : > { %v548_v0 = vpop.permute.xlu1 %547  ;;  %v546_v1 = vpop.permute.xlu0 %545 }
  0xef   : > { %598 = vst.msk [vmem:[#allocation2 + $0x20] sm:$0xff] %vm593_vm3, %v548_v0  ;;  %v568_v4 = vpop.permute.xlu2 %567 }
  0xf0   : > { %597 = vst.msk [vmem:[#allocation2 + $0x18] sm:$0xff] %vm593_vm3, %v546_v1 }
  0xf1   : > { %608 = vst.msk [vmem:[#allocation2 + $0x70] sm:$0xff] %vm593_vm3, %v568_v4 }
  0xf4   : > { %1003 = vrot.lane.b32.xlu0 %v1619_v2, %s1778_s4  ;;  %1011 = vrot.lane.b32.xlu1 %v1623_v3, %s1778_s4  ;;  %v1628_v2 = vld [vmem:[%s1839_s24 + $0x2e] sm:$0xff]  ;;  %v1633_v3 = vld [vmem:[%s1839_s24 + $0x56] sm:$0xff] }
  0xf5   : > { %1114 = vrot.lane.b32.xlu2 %v1637_v5, %s1779_s5 }
  0xf6   : > { %v554_v6 = vpop.permute.xlu1 %553  ;;  %v552_v7 = vpop.permute.xlu0 %551 }
  0xf7   : > { %601 = vst.msk [vmem:[#allocation2 + $0x38] sm:$0xff] %vm593_vm3, %v554_v6  ;;  %v574_v10 = vpop.permute.xlu2 %573 }
  0xf8   : > { %600 = vst.msk [vmem:[#allocation2 + $0x30] sm:$0xff] %vm593_vm3, %v552_v7  ;;  %v1625_v7 = vld [vmem:[%s1839_s24 + $0xa5] sm:$0xff] }
  0xf9   : > { %611 = vst.msk [vmem:[#allocation2 + $0x88] sm:$0xff] %vm593_vm3, %v574_v10  ;;  %v1643_v10 = vld [vmem:[%s1839_s24 + $0xa6] sm:$0xff] }
  0xfc   : > { %1122 = vrot.lane.b32.xlu0 %v1641_v8, %s1779_s5  ;;  %761 = vrot.lane.b32.xlu1 %v1573_v9, %s1777_s30  ;;  %v1639_v8 = vld [vmem:[%s1839_s24 + $0x86] sm:$0xff] }
  0xfd   : > { %771 = vrot.lane.b32.xlu2 %v2144_v11, %s1777_s30 }
  0xfe   : > { %v560_v12 = vpop.permute.xlu1 %559  ;;  %v558_v13 = vpop.permute.xlu0 %557 }
  0xff   : > { %604 = vst.msk [vmem:[#allocation2 + $0x50] sm:$0xff] %vm593_vm3, %v560_v12  ;;  %v655_v16 = vpop.permute.xlu2 %654 }
 0x100   : > { %603 = vst.msk [vmem:[#allocation2 + $0x48] sm:$0xff] %vm593_vm3, %v558_v13 }
 0x101   : > { %707 = vst.msk [vmem:[#allocation2 + $0x10] sm:$0xff] %vm704_vm4, %v655_v16 }
 0x104   : > { %872 = vrot.lane.b32.xlu0 %v2151_v14, %s1776_s29  ;;  %882 = vrot.lane.b32.xlu1 %v2154_v15, %s1776_s29 }
 0x105   : > { %783 = vrot.lane.b32.xlu2 %v2070_v42, %s1777_s30 }
 0x106   : > { %v566_v17 = vpop.permute.xlu1 %565  ;;  %v564_v18 = vpop.permute.xlu0 %563 }
 0x107   : > { %607 = vst.msk [vmem:[#allocation2 + $0x68] sm:$0xff] %vm593_vm3, %v566_v17  ;;  %v661_v21 = vpop.permute.xlu2 %660 }
 0x108   : > { %606 = vst.msk [vmem:[#allocation2 + $0x60] sm:$0xff] %vm593_vm3, %v564_v18 }
 0x109   : > { %710 = vst.msk [vmem:[#allocation2 + $0x28] sm:$0xff] %vm704_vm4, %v661_v21 }
 0x10c   : > { %791 = vrot.lane.b32.xlu0 %v2166_v19, %s1777_s30  ;;  %983 = vrot.lane.b32.xlu1 %v1609_v20, %s1778_s4 }
 0x10d   : > { %993 = vrot.lane.b32.xlu2 %v1614_v22, %s1778_s4 }
 0x10e   : > { %v572_v23 = vpop.permute.xlu1 %571  ;;  %v570_v24 = vpop.permute.xlu0 %569 }
 0x10f   : > { %610 = vst.msk [vmem:[#allocation2 + $0x80] sm:$0xff] %vm593_vm3, %v572_v23  ;;  %v667_v27 = vpop.permute.xlu2 %666  ;;  %v1616_v23 = vld [vmem:[%s1839_s24 + $0x5d] sm:$0xff] }
 0x110   : > { %609 = vst.msk [vmem:[#allocation2 + $0x78] sm:$0xff] %vm593_vm3, %v570_v24 }
 0x111   : > { %713 = vst.msk [vmem:[#allocation2 + $0x40] sm:$0xff] %vm704_vm4, %v667_v27  ;;  %v1629_v27 = vld [vmem:[%s1839_s24 + $0x36] sm:$0xff] }
 0x114   : > { %894 = vrot.lane.b32.xlu0 %v2178_v25, %s1776_s29  ;;  %902 = vrot.lane.b32.xlu1 %v2181_v26, %s1776_s29 }
 0x115   : > { %1094 = vrot.lane.b32.xlu2 %v1627_v28, %s1779_s5 }
 0x116   : > { %v653_v29 = vpop.permute.xlu1 %652  ;;  %v651_v30 = vpop.permute.xlu0 %650 }
 0x117   : > { %706 = vst.msk [vmem:[#allocation2 + $0x8] sm:$0xff] %vm704_vm4, %v653_v29  ;;  %v673_v33 = vpop.permute.xlu2 %672  ;;  %v1634_v29 = vld [vmem:[%s1839_s24 + $0x5e] sm:$0xff] }
 0x118   : > { %705 = vst.msk [vmem:[#allocation2] sm:$0xff] %vm704_vm4, %v651_v30 }
 0x119   : > { %716 = vst.msk [vmem:[#allocation2 + $0x58] sm:$0xff] %vm704_vm4, %v673_v33  ;;  %v1626_v33 = vld [vmem:[%s1839_s24 + $0xad] sm:$0xff] }
 0x11c   : > { %1104 = vrot.lane.b32.xlu0 %v1632_v31, %s1779_s5  ;;  %1005 = vrot.lane.b32.xlu1 %v1620_v32, %s1778_s4  ;;  %v1622_v32 = vld [vmem:[%s1839_s24 + $0x8d] sm:$0xff] }
 0x11d   : > { %1013 = vrot.lane.b32.xlu2 %v1624_v34, %s1778_s4 }
 0x11e   : > { %v659_v35 = vpop.permute.xlu1 %658  ;;  %v657_v36 = vpop.permute.xlu0 %656 }
 0x11f   : > { %709 = vst.msk [vmem:[#allocation2 + $0x20] sm:$0xff] %vm704_vm4, %v659_v35  ;;  %v679_v39 = vpop.permute.xlu2 %678  ;;  %v1640_v35 = vld [vmem:[%s1839_s24 + $0x8e] sm:$0xff] }
 0x120   : > { %708 = vst.msk [vmem:[#allocation2 + $0x18] sm:$0xff] %vm704_vm4, %v657_v36 }
 0x121   : > { %719 = vst.msk [vmem:[#allocation2 + $0x70] sm:$0xff] %vm704_vm4, %v679_v39  ;;  %v1644_v39 = vld [vmem:[%s1839_s24 + $0xae] sm:$0xff] }
 0x124   : > { %1116 = vrot.lane.b32.xlu0 %v1638_v37, %s1779_s5  ;;  %1124 = vrot.lane.b32.xlu1 %v1642_v38, %s1779_s5 }
 0x125   : > { %763 = vrot.lane.b32.xlu2 %v1574_v40, %s1777_s30 }
 0x126   : > { %v665_v41 = vpop.permute.xlu1 %664  ;;  %v663_v42 = vpop.permute.xlu0 %662 }
 0x127   : > { %712 = vst.msk [vmem:[#allocation2 + $0x38] sm:$0xff] %vm704_vm4, %v665_v41  ;;  %v685_v45 = vpop.permute.xlu2 %684 }
 0x128   : > { %711 = vst.msk [vmem:[#allocation2 + $0x30] sm:$0xff] %vm704_vm4, %v663_v42 }
 0x129   : > { %722 = vst.msk [vmem:[#allocation2 + $0x88] sm:$0xff] %vm704_vm4, %v685_v45 }
 0x12c   : > { %773 = vrot.lane.b32.xlu0 %v2093_v51, %s1777_s30  ;;  %874 = vrot.lane.b32.xlu1 %v2211_v44, %s1776_s29  ;;  %v1188_v51 = vld [vmem:[%s2470_s1 + $0x18] sm:$0xff] }
 0x12d   : > { %884 = vrot.lane.b32.xlu2 %v2219_v46, %s1776_s29  ;;  %1670 = vmatpush.msra.mxu2 %v1188_v51 }
 0x12e   : > { %v671_v49 = vpop.permute.xlu1 %670  ;;  %v669_v50 = vpop.permute.xlu0 %668  ;;  %1669 = vmatpush.msra.mxu1 %v1188_v51  ;;  %1671 = vmatpush.msra.mxu3 %v1188_v51 }
 0x12f   : > { %715 = vst.msk [vmem:[#allocation2 + $0x50] sm:$0xff] %vm704_vm4, %v671_v49  ;;  %v1002_v52 = vpop.permute.xlu2 %1001  ;;  %1265 = vmatpush.msra.mxu0 %v1188_v51  ;;  %1673 = vmatpush.msra.mxu2 %v1187_v53  ;;  %v1630_v51 = vld [vmem:[%s1839_s24 + $0x3e] sm:$0xff] }
 0x130   : > { %714 = vst.msk [vmem:[#allocation2 + $0x48] sm:$0xff] %vm704_vm4, %v669_v50  ;;  %1672 = vmatpush.msra.mxu1 %v1187_v53  ;;  %1674 = vmatpush.msra.mxu3 %v1187_v53  ;;  %v1617_v50 = vld [vmem:[%s1839_s24 + $0x65] sm:$0xff] }
 0x131   : > { %1676 = vmatpush.msra.mxu2 %v1186_v56  ;;  %1266 = vmatpush.msra.mxu0 %v1187_v53 }
 0x132   : > { %1675 = vmatpush.msra.mxu1 %v1186_v56  ;;  %1677 = vmatpush.msra.mxu3 %v1186_v56 }
 0x133   : > { %1679 = vmatpush.msra.mxu2 %v1185_v58  ;;  %1267 = vmatpush.msra.mxu0 %v1186_v56 }
 0x134   : > { %785 = vrot.lane.b32.xlu0 %v2115_v60, %s1777_s30  ;;  %793 = vrot.lane.b32.xlu1 %v2118_v61, %s1777_s30  ;;  %v1615_v60 = vld [vmem:[%s1839_s24 + $0x55] sm:$0xff] }
 0x135   : > { %985 = vrot.lane.b32.xlu2 %v1610_v57, %s1778_s4  ;;  %1678 = vmatpush.msra.mxu1 %v1185_v58 }
 0x136   : > { %v677_v59 = vpop.permute.xlu1 %676  ;;  %v675_v62 = vpop.permute.xlu0 %674  ;;  %1680 = vmatpush.msra.mxu3 %v1185_v58  ;;  %1268 = vmatpush.msra.mxu0 %v1185_v58 }
 0x137   : > { %718 = vst.msk [vmem:[#allocation2 + $0x68] sm:$0xff] %vm704_vm4, %v677_v59  ;;  %v881_v61 = vpop.permute.xlu2 %880 }
 0x138   : > { %717 = vst.msk [vmem:[#allocation2 + $0x60] sm:$0xff] %vm704_vm4, %v675_v62 }
 0x13c   : > { %995 = vrot.lane.b32.xlu0 %v1615_v60, %s1778_s4  ;;  %896 = vrot.lane.b32.xlu1 %v2103_v55, %s1776_s29  ;;  %v1621_v55 = vld [vmem:[%s1839_s24 + $0x85] sm:$0xff] }
 0x13d   : > { %904 = vrot.lane.b32.xlu2 %v1607_v63, %s1776_s29 }
 0x13e   : > { %v683_v0 = vpop.permute.xlu1 %682  ;;  %v681_v1 = vpop.permute.xlu0 %680 }
 0x13f   : > { %721 = vst.msk [vmem:[#allocation2 + $0x80] sm:$0xff] %vm704_vm4, %v683_v0  ;;  %v992_v4 = vpop.permute.xlu2 %991 }
 0x140   : > { %720 = vst.msk [vmem:[#allocation2 + $0x78] sm:$0xff] %vm704_vm4, %v681_v1 }
 0x144   : > { %1096 = vrot.lane.b32.xlu0 %v1628_v2, %s1779_s5  ;;  %1106 = vrot.lane.b32.xlu1 %v1633_v3, %s1779_s5 }
 0x145   : > { %1007 = vrot.lane.b32.xlu2 %v1621_v55, %s1778_s4 }
 0x146   : > { %v891_v5 = vpop.permute.xlu1 %890  ;;  %v780_v6 = vpop.permute.xlu0 %779 }
 0x147   : > { %825 = vst.msk [vmem:[#allocation2 + $0x48] sm:$0xff] %vm815_vm6, %v780_v6  ;;  %v1103_v9 = vpop.permute.xlu2 %1102 }
 0x148   : > { %936 = vst.msk [vmem:[#allocation2 + $0x48] sm:$0xff] %vm926_vm7, %v891_v5 }
 0x149   : > { %1047 = vst.msk [vmem:[#allocation2 + $0x48] sm:$0xff] %vm1037_vm8, %v1002_v52 }
 0x14c   : > { %1015 = vrot.lane.b32.xlu0 %v1625_v7, %s1778_s4  ;;  %1118 = vrot.lane.b32.xlu1 %v1639_v8, %s1779_s5 }
 0x14d   : > { %1126 = vrot.lane.b32.xlu2 %v1643_v10, %s1779_s5 }
 0x14e   : > { %v770_v12 = vpop.permute.xlu1 %769  ;;  %v1113_v13 = vpop.permute.xlu0 %1112 }
 0x14f   : > { %820 = vst.msk [vmem:[#allocation2 + $0x20] sm:$0xff] %vm815_vm6, %v770_v12  ;;  %v1115_v16 = vpop.permute.xlu2 %1114 }
 0x150   : > { %1158 = vst.msk [vmem:[#allocation2 + $0x48] sm:$0xff] %vm1148_vm9, %v1113_v13 }
 0x151   : > { %931 = vst.msk [vmem:[#allocation2 + $0x20] sm:$0xff] %vm926_vm7, %v881_v61 }
 0x152   : > { %1042 = vst.msk [vmem:[#allocation2 + $0x20] sm:$0xff] %vm1037_vm8, %v992_v4 }
 0x153   : > { %1153 = vst.msk [vmem:[#allocation2 + $0x20] sm:$0xff] %vm1148_vm9, %v1103_v9 }
 0x154   : > { %765 = vrot.lane.b32.xlu0 %v2151_v14, %s1777_s30  ;;  %775 = vrot.lane.b32.xlu1 %v2154_v15, %s1777_s30 }
 0x155   : > { %876 = vrot.lane.b32.xlu2 %v2085_v48, %s1776_s29  ;;  %v1611_v48 = vld [vmem:[%s1839_s24 + $0x35] sm:$0xff] }
 0x156   : > { %v782_v17 = vpop.permute.xlu0 %781  ;;  %v790_v18 = vpop.permute.xlu1 %789 }
 0x157   : > { %826 = vst.msk [vmem:[#allocation2 + $0x50] sm:$0xff] %vm815_vm6, %v782_v17  ;;  %v1176_v20 = vld [vmem:[#allocation2 + $0x48] sm:$0xff]  ;;  %v772_v21 = vpop.permute.xlu2 %771 }
 0x158   : > { %830 = vst.msk [vmem:[#allocation2 + $0x70] sm:$0xff] %vm815_vm6, %v790_v18  ;;  %1655 = vmatmul.msk.f32.vlgmr.msra.gmra.mxu2 %vm1194_vm10, %v1176_v20 }
 0x159   : > { %821 = vst.msk [vmem:[#allocation2 + $0x28] sm:$0xff] %vm815_vm6, %v772_v21 }
 0x15a   : > { %v1171_v14 = vld [vmem:[#allocation2 + $0x20] sm:$0xff] }
 0x15b   : > { %1650 = vmatmul.msk.f32.vlgmr.msra.gmra.mxu1 %vm1194_vm10, %v1171_v14 }
 0x15c   : > { %886 = vrot.lane.b32.xlu0 %v2073_v43, %s1776_s29  ;;  %787 = vrot.lane.b32.xlu1 %v2178_v25, %s1777_s30 }
 0x15d   : > { %795 = vrot.lane.b32.xlu2 %v2181_v26, %s1777_s30  ;;  %v1608_v26 = vld [vmem:[%s1839_s24 + $0xac] sm:$0xff] }
 0x15e   : > { %v893_v15 = vpop.permute.xlu0 %892  ;;  %v901_v22 = vpop.permute.xlu1 %900 }
 0x15f   : > { %937 = vst.msk [vmem:[#allocation2 + $0x50] sm:$0xff] %vm926_vm7, %v893_v15  ;;  %v784_v24 = vpop.permute.xlu2 %783 }
 0x160   : > { %941 = vst.msk [vmem:[#allocation2 + $0x70] sm:$0xff] %vm926_vm7, %v901_v22 }
 0x161   : > { %827 = vst.msk [vmem:[#allocation2 + $0x58] sm:$0xff] %vm815_vm6, %v784_v24 }
 0x164   : > { %987 = vrot.lane.b32.xlu0 %v1611_v48, %s1778_s4  ;;  %997 = vrot.lane.b32.xlu1 %v1616_v23, %s1778_s4 }
 0x165   : > { %898 = vrot.lane.b32.xlu2 %v2166_v19, %s1776_s29 }
 0x166   : > { %v1004_v43 = vpop.permute.xlu0 %1003  ;;  %v1012_v25 = vpop.permute.xlu1 %1011 }
 0x167   : > { %1048 = vst.msk [vmem:[#allocation2 + $0x50] sm:$0xff] %vm1037_vm8, %v1004_v43  ;;  %v994_v28 = vpop.permute.xlu2 %993 }
 0x168   : > { %1159 = vst.msk [vmem:[#allocation2 + $0x50] sm:$0xff] %vm1148_vm9, %v1115_v16 }
 0x169   : > { %1052 = vst.msk [vmem:[#allocation2 + $0x70] sm:$0xff] %vm1037_vm8, %v1012_v25  ;;  %v2389_v25 = vld [vmem:[%s2471_s2] ss:$0 sm:$0xff] }
 0x16c   : > { %906 = vrot.lane.b32.xlu0 %v1608_v26, %s1776_s29  ;;  %1098 = vrot.lane.b32.xlu1 %v1629_v27, %s1779_s5 }
 0x16d   : > { %1108 = vrot.lane.b32.xlu2 %v1634_v29, %s1779_s5 }
 0x16e   : > { %v1123_v30 = vpop.permute.xlu0 %1122  ;;  %v762_v31 = vpop.permute.xlu1 %761 }
 0x16f   : > { %1163 = vst.msk [vmem:[#allocation2 + $0x70] sm:$0xff] %vm1148_vm9, %v1123_v30  ;;  %v1177_v19 = vld [vmem:[#allocation2 + $0x50] sm:$0xff]  ;;  %v1095_v34 = vpop.permute.xlu2 %1094 }
 0x170   : > { %816 = vst.msk [vmem:[#allocation2] sm:$0xff] %vm815_vm6, %v762_v31  ;;  %1656 = vmatmul.msk.f32.gmra.mxu2 %vm1194_vm10, %v1177_v19 }
 0x174   : > { %1009 = vrot.lane.b32.xlu0 %v1622_v32, %s1778_s4  ;;  %1017 = vrot.lane.b32.xlu1 %v1626_v33, %s1778_s4 }
 0x175   : > { %1120 = vrot.lane.b32.xlu2 %v1640_v35, %s1779_s5 }
 0x176   : > { %v873_v36 = vpop.permute.xlu0 %872  ;;  %v883_v37 = vpop.permute.xlu1 %882  ;;  %v1181_v38 = vld [vmem:[#allocation2 + $0x70] sm:$0xff] }
 0x177   : > { %927 = vst.msk [vmem:[#allocation2] sm:$0xff] %vm926_vm7, %v873_v36  ;;  %1660 = vmatmul.msk.f32.vlgmr.msra.gmra.mxu3 %vm1194_vm10, %v1181_v38  ;;  %v1014_v40 = vpop.permute.xlu2 %1013 }
 0x178   : > { %932 = vst.msk [vmem:[#allocation2 + $0x28] sm:$0xff] %vm926_vm7, %v883_v37 }
 0x179   : > { %1043 = vst.msk [vmem:[#allocation2 + $0x28] sm:$0xff] %vm1037_vm8, %v994_v28 }
 0x17c   : > { %1128 = vrot.lane.b32.xlu0 %v1644_v39, %s1779_s5  ;;  %767 = vrot.lane.b32.xlu1 %v2211_v44, %s1777_s30  ;;  %v1612_v44 = vld [vmem:[%s1839_s24 + $0x3d] sm:$0xff] }
 0x17d   : > { %777 = vrot.lane.b32.xlu2 %v2219_v46, %s1777_s30 }
 0x17e   : > { %v792_v41 = vpop.permute.xlu0 %791  ;;  %v984_v42 = vpop.permute.xlu1 %983 }
 0x17f   : > { %831 = vst.msk [vmem:[#allocation2 + $0x78] sm:$0xff] %vm815_vm6, %v792_v41  ;;  %v764_v45 = vpop.permute.xlu2 %763 }
 0x180   : > { %1038 = vst.msk [vmem:[#allocation2] sm:$0xff] %vm1037_vm8, %v984_v42 }
 0x181   : > { %1149 = vst.msk [vmem:[#allocation2] sm:$0xff] %vm1148_vm9, %v1095_v34 }
 0x182   : > { %817 = vst.msk [vmem:[#allocation2 + $0x8] sm:$0xff] %vm815_vm6, %v764_v45 }
 0x184   : > { %878 = vrot.lane.b32.xlu0 %v2144_v11, %s1776_s29  ;;  %888 = vrot.lane.b32.xlu1 %v2100_v54, %s1776_s29  ;;  %v1635_v54 = vld [vmem:[%s1839_s24 + $0x66] sm:$0xff]  ;;  %s1682_s24 = smul.u32 36, %s2484_s13 }
 0x185   : > { %989 = vrot.lane.b32.xlu2 %v1612_v44, %s1778_s4 }
 0x186   : > { %v895_v47 = vpop.permute.xlu0 %894  ;;  %v903_v49 = vpop.permute.xlu1 %902  ;;  %s236_s25 = sadd.s32 %s1682_s24, %s2486_s23 }
 0x187   : > { %938 = vst.msk [vmem:[#allocation2 + $0x58] sm:$0xff] %vm926_vm7, %v895_v47  ;;  %v885_v11 = vpop.permute.xlu2 %884  ;;  %s1500_s12 = sshll.u32 %s236_s25, 3 }
 0x188   : > { %942 = vst.msk [vmem:[#allocation2 + $0x78] sm:$0xff] %vm926_vm7, %v903_v49  ;;  %v1167_v46 = vld [vmem:[#allocation2] sm:$0xff]  ;;  %s2397_s29 = scalar_lea.vmem %s2472_s3, %s1500_s12 }
 0x189   : > { %1053 = vst.msk [vmem:[#allocation2 + $0x78] sm:$0xff] %vm1037_vm8, %v1014_v40  ;;  %1646 = vmatmul.msk.f32.vlgmr.msra.gmra.mxu0 %vm1194_vm10, %v1167_v46 }
 0x18c   : > { %999 = vrot.lane.b32.xlu0 %v1617_v50, %s1778_s4  ;;  %1100 = vrot.lane.b32.xlu1 %v1630_v51, %s1779_s5 }
 0x18d   : > { %1110 = vrot.lane.b32.xlu2 %v1635_v54, %s1779_s5 }
 0x18e   : > { %v1105_v52 = vpop.permute.xlu0 %1104  ;;  %v1006_v53 = vpop.permute.xlu1 %1005 }
 0x18f   : > { %1154 = vst.msk [vmem:[#allocation2 + $0x28] sm:$0xff] %vm1148_vm9, %v1105_v52  ;;  %v986_v56 = vpop.permute.xlu2 %985 }
 0x190   : > { %1049 = vst.msk [vmem:[#allocation2 + $0x58] sm:$0xff] %vm1037_vm8, %v1006_v53 }
 0x196   : > { %v1117_v57 = vpop.permute.xlu0 %1116  ;;  %v1125_v58 = vpop.permute.xlu1 %1124  ;;  %v1172_v59 = vld [vmem:[#allocation2 + $0x28] sm:$0xff] }
 0x197   : > { %1160 = vst.msk [vmem:[#allocation2 + $0x58] sm:$0xff] %vm1148_vm9, %v1117_v57  ;;  %1651 = vmatmul.msk.f32.gmra.mxu1 %vm1194_vm10, %v1172_v59  ;;  %v905_v62 = vpop.permute.xlu2 %904 }
 0x198   : > { %1164 = vst.msk [vmem:[#allocation2 + $0x78] sm:$0xff] %vm1148_vm9, %v1125_v58 }
 0x19e   : > { %v774_v60 = vpop.permute.xlu0 %773  ;;  %v875_v61 = vpop.permute.xlu1 %874  ;;  %v1178_v63 = vld [vmem:[#allocation2 + $0x58] sm:$0xff] }
 0x19f   : > { %822 = vst.msk [vmem:[#allocation2 + $0x30] sm:$0xff] %vm815_vm6, %v774_v60  ;;  %1657 = vmatmul.msk.f32.gmra.mxu2 %vm1194_vm10, %v1178_v63  ;;  %v1182_v0 = vld [vmem:[#allocation2 + $0x78] sm:$0xff]  ;;  %v1008_v1 = vpop.permute.xlu2 %1007 }
 0x1a0   : > { %933 = vst.msk [vmem:[#allocation2 + $0x30] sm:$0xff] %vm926_vm7, %v885_v11  ;;  %1661 = vmatmul.msk.f32.gmra.mxu3 %vm1194_vm10, %v1182_v0 }
 0x1a1   : > { %928 = vst.msk [vmem:[#allocation2 + $0x8] sm:$0xff] %vm926_vm7, %v875_v61 }
 0x1a2   : > { %1039 = vst.msk [vmem:[#allocation2 + $0x8] sm:$0xff] %vm1037_vm8, %v986_v56 }
 0x1a6   : > { %v786_v2 = vpop.permute.xlu0 %785  ;;  %v794_v3 = vpop.permute.xlu1 %793 }
 0x1a7   : > { %828 = vst.msk [vmem:[#allocation2 + $0x60] sm:$0xff] %vm815_vm6, %v786_v2  ;;  %v1127_v4 = vpop.permute.xlu2 %1126 }
 0x1a8   : > { %832 = vst.msk [vmem:[#allocation2 + $0x80] sm:$0xff] %vm815_vm6, %v794_v3 }
 0x1a9   : > { %943 = vst.msk [vmem:[#allocation2 + $0x80] sm:$0xff] %vm926_vm7, %v905_v62 }
 0x1ae   : > { %v996_v55 = vpop.permute.xlu0 %995  ;;  %v897_v5 = vpop.permute.xlu1 %896 }
 0x1af   : > { %1044 = vst.msk [vmem:[#allocation2 + $0x30] sm:$0xff] %vm1037_vm8, %v996_v55  ;;  %v877_v6 = vpop.permute.xlu2 %876 }
 0x1b0   : > { %939 = vst.msk [vmem:[#allocation2 + $0x60] sm:$0xff] %vm926_vm7, %v897_v5 }
 0x1b1   : > { %1050 = vst.msk [vmem:[#allocation2 + $0x60] sm:$0xff] %vm1037_vm8, %v1008_v1 }
 0x1b6   : > { %v1097_v7 = vpop.permute.xlu0 %1096  ;;  %v1107_v8 = vpop.permute.xlu1 %1106 }
 0x1b7   : > { %1150 = vst.msk [vmem:[#allocation2 + $0x8] sm:$0xff] %vm1148_vm9, %v1097_v7  ;;  %v796_v9 = vpop.permute.xlu2 %795 }
 0x1b8   : > { %1155 = vst.msk [vmem:[#allocation2 + $0x30] sm:$0xff] %vm1148_vm9, %v1107_v8 }
 0x1b9   : > { %833 = vst.msk [vmem:[#allocation2 + $0x88] sm:$0xff] %vm815_vm6, %v796_v9 }
 0x1be   : > { %v1016_v10 = vpop.permute.xlu0 %1015  ;;  %v1119_v12 = vpop.permute.xlu1 %1118  ;;  %v1168_v13 = vld [vmem:[#allocation2 + $0x8] sm:$0xff] }
 0x1bf   : > { %1054 = vst.msk [vmem:[#allocation2 + $0x80] sm:$0xff] %vm1037_vm8, %v1016_v10  ;;  %1647 = vmatmul.msk.f32.gmra.mxu0 %vm1194_vm10, %v1168_v13  ;;  %v1173_v16 = vld [vmem:[#allocation2 + $0x30] sm:$0xff]  ;;  %v899_v17 = vpop.permute.xlu2 %898 }
 0x1c0   : > { %1165 = vst.msk [vmem:[#allocation2 + $0x80] sm:$0xff] %vm1148_vm9, %v1127_v4  ;;  %1652 = vmatmul.msk.f32.gmra.mxu1 %vm1194_vm10, %v1173_v16 }
 0x1c1   : > { %1161 = vst.msk [vmem:[#allocation2 + $0x60] sm:$0xff] %vm1148_vm9, %v1119_v12 }
 0x1c6   : > { %v766_v18 = vpop.permute.xlu0 %765  ;;  %v776_v20 = vpop.permute.xlu1 %775 }
 0x1c7   : > { %818 = vst.msk [vmem:[#allocation2 + $0x10] sm:$0xff] %vm815_vm6, %v766_v18  ;;  %v1183_v21 = vld [vmem:[#allocation2 + $0x80] sm:$0xff]  ;;  %v1109_v15 = vpop.permute.xlu2 %1108 }
 0x1c8   : > { %929 = vst.msk [vmem:[#allocation2 + $0x10] sm:$0xff] %vm926_vm7, %v877_v6  ;;  %v1179_v14 = vld [vmem:[#allocation2 + $0x60] sm:$0xff]  ;;  %1662 = vmatmul.msk.f32.gmra.mxu3 %vm1194_vm10, %v1183_v21 }
 0x1c9   : > { %823 = vst.msk [vmem:[#allocation2 + $0x38] sm:$0xff] %vm815_vm6, %v776_v20  ;;  %1658 = vmatmul.msk.f32.gmra.mxu2 %vm1194_vm10, %v1179_v14 }
 0x1ce   : > { %v887_v22 = vpop.permute.xlu0 %886  ;;  %v788_v48 = vpop.permute.xlu1 %787 }
 0x1cf   : > { %934 = vst.msk [vmem:[#allocation2 + $0x38] sm:$0xff] %vm926_vm7, %v887_v22  ;;  %v1121_v23 = vpop.permute.xlu2 %1120 }
 0x1d0   : > { %829 = vst.msk [vmem:[#allocation2 + $0x68] sm:$0xff] %vm815_vm6, %v788_v48 }
 0x1d1   : > { %940 = vst.msk [vmem:[#allocation2 + $0x68] sm:$0xff] %vm926_vm7, %v899_v17 }
 0x1d6   : > { %v988_v24 = vpop.permute.xlu0 %987  ;;  %v998_v43 = vpop.permute.xlu1 %997 }
 0x1d7   : > { %1040 = vst.msk [vmem:[#allocation2 + $0x10] sm:$0xff] %vm1037_vm8, %v988_v24  ;;  %v778_v28 = vpop.permute.xlu2 %777 }
 0x1d8   : > { %1045 = vst.msk [vmem:[#allocation2 + $0x38] sm:$0xff] %vm1037_vm8, %v998_v43  ;;  %v1282_v26 = vpop.f32.mrf.mxu1 }
 0x1d9   : > { %1156 = vst.msk [vmem:[#allocation2 + $0x38] sm:$0xff] %vm1148_vm9, %v1109_v15  ;;  %v1283_v27 = vadd.f32 %v2389_v25, %v1282_v26 }
 0x1da   : > { %824 = vst.msk [vmem:[#allocation2 + $0x40] sm:$0xff] %vm815_vm6, %v778_v28 }
 0x1db   : > { %v1297_v29 = vpop.f32.mrf.mxu2  ;;  %1328 = vst [vmem:[%s2397_s29 + $0x20] sm:$0xff] %v1283_v27 }
 0x1dc   : > { %v1298_v30 = vadd.f32 %v2389_v25, %v1297_v29 }
 0x1de   : > { %1333 = vst [vmem:[%s2397_s29 + $0x48] sm:$0xff] %v1298_v30  ;;  %v907_v31 = vpop.permute.xlu0 %906  ;;  %v1099_v19 = vpop.permute.xlu1 %1098 }
 0x1df   : > { %944 = vst.msk [vmem:[#allocation2 + $0x88] sm:$0xff] %vm926_vm7, %v907_v31  ;;  %v990_v40 = vpop.permute.xlu2 %989 }
 0x1e0   : > { %1151 = vst.msk [vmem:[#allocation2 + $0x10] sm:$0xff] %vm1148_vm9, %v1099_v19  ;;  %v1174_v32 = vld [vmem:[#allocation2 + $0x38] sm:$0xff] }
 0x1e1   : > { %1653 = vmatmul.msk.f32.gmra.mxu1 %vm1194_vm10, %v1174_v32 }
 0x1e6   : > { %v1010_v33 = vpop.permute.xlu0 %1009  ;;  %v1018_v34 = vpop.permute.xlu1 %1017 }
 0x1e7   : > { %1051 = vst.msk [vmem:[#allocation2 + $0x68] sm:$0xff] %vm1037_vm8, %v1010_v33  ;;  %v1169_v35 = vld [vmem:[#allocation2 + $0x10] sm:$0xff]  ;;  %v1111_v46 = vpop.permute.xlu2 %1110 }
 0x1e8   : > { %1162 = vst.msk [vmem:[#allocation2 + $0x68] sm:$0xff] %vm1148_vm9, %v1121_v23  ;;  %1648 = vmatmul.msk.f32.gmra.mxu0 %vm1194_vm10, %v1169_v35 }
 0x1e9   : > { %1055 = vst.msk [vmem:[#allocation2 + $0x88] sm:$0xff] %vm1037_vm8, %v1018_v34 }
 0x1ee   : > { %v1129_v36 = vpop.permute.xlu0 %1128  ;;  %v768_v37 = vpop.permute.xlu1 %767 }
 0x1ef   : > { %1166 = vst.msk [vmem:[#allocation2 + $0x88] sm:$0xff] %vm1148_vm9, %v1129_v36  ;;  %v1180_v38 = vld [vmem:[#allocation2 + $0x68] sm:$0xff] }
 0x1f0   : > { %819 = vst.msk [vmem:[#allocation2 + $0x18] sm:$0xff] %vm815_vm6, %v768_v37  ;;  %1659 = vmatmul.msk.f32.gmra.mxu2 %vm1194_vm10, %v1180_v38 }
 0x1f3   : > { %v1300_v39 = vpop.f32.mrf.mxu2 }
 0x1f4   : > { %v1301_v41 = vadd.f32 %v2389_v25, %v1300_v39 }
 0x1f6   : > { %1334 = vst [vmem:[%s2397_s29 + $0x50] sm:$0xff] %v1301_v41  ;;  %v879_v42 = vpop.permute.xlu0 %878  ;;  %v889_v45 = vpop.permute.xlu1 %888  ;;  %v1184_v44 = vld [vmem:[#allocation2 + $0x88] sm:$0xff] }
 0x1f7   : > { %930 = vst.msk [vmem:[#allocation2 + $0x18] sm:$0xff] %vm926_vm7, %v879_v42  ;;  %1663 = vmatmul.msk.f32.gmra.mxu3 %vm1194_vm10, %v1184_v44 }
 0x1f8   : > { %1041 = vst.msk [vmem:[#allocation2 + $0x18] sm:$0xff] %vm1037_vm8, %v990_v40 }
 0x1f9   : > { %935 = vst.msk [vmem:[#allocation2 + $0x40] sm:$0xff] %vm926_vm7, %v889_v45 }
 0x1fa   : > { %v1312_v47 = vpop.f32.mrf.mxu3 }
 0x1fb   : > { %v1313_v49 = vadd.f32 %v2389_v25, %v1312_v47 }
 0x1fd   : > { %1338 = vst [vmem:[%s2397_s29 + $0x70] sm:$0xff] %v1313_v49 }
 0x1fe   : > { %v1000_v50 = vpop.permute.xlu0 %999  ;;  %v1101_v51 = vpop.permute.xlu1 %1100 }
 0x1ff   : > { %1046 = vst.msk [vmem:[#allocation2 + $0x40] sm:$0xff] %vm1037_vm8, %v1000_v50 }
 0x200   : > { %1157 = vst.msk [vmem:[#allocation2 + $0x40] sm:$0xff] %vm1148_vm9, %v1111_v46 }
 0x201   : > { %1152 = vst.msk [vmem:[#allocation2 + $0x18] sm:$0xff] %vm1148_vm9, %v1101_v51 }
 0x206   : > { %v1270_v11 = vpop.f32.mrf.mxu0 }
 0x207   : > { %v1175_v54 = vld [vmem:[#allocation2 + $0x40] sm:$0xff]  ;;  %v1271_v52 = vadd.f32 %v2389_v25, %v1270_v11 }
 0x208   : > { %v1170_v53 = vld [vmem:[#allocation2 + $0x18] sm:$0xff]  ;;  %1654 = vmatmul.msk.f32.gmra.mxu1 %vm1194_vm10, %v1175_v54 }
 0x209   : > { %1649 = vmatmul.msk.f32.gmra.mxu0 %vm1194_vm10, %v1170_v53  ;;  %1324 = vst [vmem:[%s2397_s29] sm:$0xff] %v1271_v52 }
 0x214   : > { %v1285_v56 = vpop.f32.mrf.mxu1 }
 0x215   : > { %v1286_v57 = vadd.f32 %v2389_v25, %v1285_v56 }
 0x217   : > { %1329 = vst [vmem:[%s2397_s29 + $0x28] sm:$0xff] %v1286_v57 }
 0x222   : > { %v1303_v58 = vpop.f32.mrf.mxu2 }
 0x223   : > { %v1304_v59 = vadd.f32 %v2389_v25, %v1303_v58  ;;  %v1315_v62 = vpop.f32.mrf.mxu3 }
 0x224   : > { %v1316_v60 = vadd.f32 %v2389_v25, %v1315_v62 }
 0x225   : > { %1335 = vst [vmem:[%s2397_s29 + $0x58] sm:$0xff] %v1304_v59 }
 0x226   : > { %1339 = vst [vmem:[%s2397_s29 + $0x78] sm:$0xff] %v1316_v60 }
 0x23c   : > { %v1273_v61 = vpop.f32.mrf.mxu0 }
 0x23d   : > { %v1274_v63 = vadd.f32 %v2389_v25, %v1273_v61  ;;  %v1288_v0 = vpop.f32.mrf.mxu1 }
 0x23e   : > { %v1289_v1 = vadd.f32 %v2389_v25, %v1288_v0 }
 0x23f   : > { %1325 = vst [vmem:[%s2397_s29 + $0x8] sm:$0xff] %v1274_v63 }
 0x240   : > { %1330 = vst [vmem:[%s2397_s29 + $0x30] sm:$0xff] %v1289_v1 }
 0x24b   : > { %v1318_v2 = vpop.f32.mrf.mxu3 }
 0x24c   : > { %v1306_v3 = vpop.f32.mrf.mxu2  ;;  %v1319_v4 = vadd.f32 %v2389_v25, %v1318_v2 }
 0x24d   : > { %v1307_v55 = vadd.f32 %v2389_v25, %v1306_v3 }
 0x24e   : > { %1340 = vst [vmem:[%s2397_s29 + $0x80] sm:$0xff] %v1319_v4 }
 0x24f   : > { %1336 = vst [vmem:[%s2397_s29 + $0x60] sm:$0xff] %v1307_v55 }
 0x25e   : > { %v1291_v5 = vpop.f32.mrf.mxu1 }
 0x25f   : > { %v1292_v6 = vadd.f32 %v2389_v25, %v1291_v5 }
 0x261   : > { %1331 = vst [vmem:[%s2397_s29 + $0x38] sm:$0xff] %v1292_v6 }
 0x265   : > { %v1276_v7 = vpop.f32.mrf.mxu0 }
 0x266   : > { %v1277_v8 = vadd.f32 %v2389_v25, %v1276_v7 }
 0x268   : > { %1326 = vst [vmem:[%s2397_s29 + $0x10] sm:$0xff] %v1277_v8 }
 0x273   : > { %v1309_v9 = vpop.f32.mrf.mxu2 }
 0x274   : > { %v1310_v10 = vadd.f32 %v2389_v25, %v1309_v9 }
 0x276   : > { %1337 = vst [vmem:[%s2397_s29 + $0x68] sm:$0xff] %v1310_v10 }
 0x27a   : > { %v1321_v12 = vpop.f32.mrf.mxu3 }
 0x27b   : > { %v1322_v13 = vadd.f32 %v2389_v25, %v1321_v12 }
 0x27d   : > { %1341 = vst [vmem:[%s2397_s29 + $0x88] sm:$0xff] %v1322_v13 }
 0x285   : > { %v1294_v16 = vpop.f32.mrf.mxu1 }
 0x286   : > { %v1279_v17 = vpop.f32.mrf.mxu0  ;;  %v1295_v18 = vadd.f32 %v2389_v25, %v1294_v16 }
 0x287   : > { %v1280_v20 = vadd.f32 %v2389_v25, %v1279_v17 }
 0x288   : > { %1332 = vst [vmem:[%s2397_s29 + $0x40] sm:$0xff] %v1295_v18 }
 0x289   : > { %1327 = vst [vmem:[%s2397_s29 + $0x18] sm:$0xff] %v1280_v20 }
 0x28a PF: > { %s13_s16 = sadd.s32 1, %s1770_s16   ;;  %s2473_s12 = smov %s1762_s14 }
 0x28b   : > { %p10_p7 = scmp.ge.s32.totalorder %s13_s16, 6   ;;  %s2474_s13 = smov %s1766_s15 }
 0x28c   : > { %s2475_s14 = smov %s2478_s17  ;;  %s2476_s15 = smov %s2482_s18 }
 0x28d   :  { %12 = sbr.rel (!%p10_p7) target bundleno = 3 (0x3), region = 77 }

</bundles_post_ra>
